<compile_context>
chip_gen: v7x
topology: tpu7x:2x2x1
jax: 0.10.0
libtpu: 0.0.40
codegen_flags: <defaults>
</compile_context>

<pallas_src>
import functools

import jax
import jax.numpy as jnp
from jax import lax
from jax.experimental import pallas as pl
from jax.experimental.pallas import tpu as pltpu


def _round_up(x, m):
    return (x + m - 1) // m * m


# --------------------- single fused kernel: whole forward --------------------

def _fused_hgt_kernel(x_aug_ref, w_in_ref, a_ref, w_stack_ref, b_stack_ref,
                      selm_ref, seld_ref, y_ref, *, num_layers, num_heads):
    # 1) both per-node-type Linears (+biases via indicator columns) as one
    #    block-diagonal matmul, then relu_().  Kept f32 so the folded bias rows
    #    stay exact.
    x = jnp.maximum(
        jnp.dot(x_aug_ref[...], w_in_ref[...],
                preferred_element_type=jnp.float32),
        0.0)

    a = a_ref[...]          # f32 sym-normalized (A + I); f32 for accuracy
    selm = selm_ref[...]    # one-hot row selectors for m_index          (f32)
    seld = seld_ref[...]    # one-hot row selectors for n1 + d_index     (f32)

    score = jnp.zeros(y_ref.shape, jnp.float32)

    # 2)+4) num_layers GCNII blocks, each num_heads GCNConv layers.  Each
    # block's output is immediately folded into the edge dot products
    # (feature concat over blocks == sum of per-block partial dot products),
    # so the concatenated slab never leaves VMEM.
    for blk in range(num_layers):
        def head_body(h, xc):
            l = blk * num_heads + h
            w = w_stack_ref[l]                       # [h_pad, h_pad] bf16
            b = b_stack_ref[l]                       # [1, h_pad]     f32
            xw = jnp.dot(xc.astype(jnp.bfloat16), w,
                         preferred_element_type=jnp.float32)
            # GCNConv (PyG order): lin -> propagate -> + bias
            return jnp.dot(a, xw, preferred_element_type=jnp.float32) + b

        x = lax.fori_loop(0, num_heads, head_body, x, unroll=True)

        em = jnp.dot(selm, x, preferred_element_type=jnp.float32)
        ed = jnp.dot(seld, x, preferred_element_type=jnp.float32)
        score = score + jnp.sum(em * ed, axis=1, keepdims=True)

    y_ref[...] = score


def fused_hgt_forward(x_aug, w_in, a_norm, w_stack, b_stack, selm, seld,
                      num_layers, num_heads, cost):
    n_pad, k_in_pad = x_aug.shape
    h_pad = w_in.shape[1]
    l_total = w_stack.shape[0]
    e_rows = selm.shape[0]

    in_bytes = sum(int(t.size) * t.dtype.itemsize
                   for t in (x_aug, w_in, a_norm, w_stack, b_stack, selm, seld))
    # explicit VMEM budget (leave headroom, cap below v7x's 64 MiB)
    vmem_limit = int(min(64 << 20, max(16 << 20, 4 * in_bytes)))

    kernel = functools.partial(_fused_hgt_kernel,
                               num_layers=num_layers, num_heads=num_heads)

    return pl.pallas_call(
        kernel,
        out_shape=jax.ShapeDtypeStruct((e_rows, 1), jnp.float32),
        grid=(1,),
        in_specs=[
            pl.BlockSpec((n_pad, k_in_pad), lambda i: (0, 0)),      # x_aug
            pl.BlockSpec((k_in_pad, h_pad), lambda i: (0, 0)),      # w_in
            pl.BlockSpec((n_pad, n_pad), lambda i: (0, 0)),         # A_norm (f32)
            pl.BlockSpec((l_total, h_pad, h_pad), lambda i: (0, 0, 0)),  # W stack
            pl.BlockSpec((l_total, 1, h_pad), lambda i: (0, 0, 0)),      # b stack
            pl.BlockSpec((e_rows, n_pad), lambda i: (0, 0)),        # sel m
            pl.BlockSpec((e_rows, n_pad), lambda i: (0, 0)),        # sel d
        ],
        out_specs=pl.BlockSpec((e_rows, 1), lambda i: (0, 0)),
        compiler_params=pltpu.CompilerParams(
            dimension_semantics=("arbitrary",),
            vmem_limit_bytes=vmem_limit),
        cost_estimate=cost,
    )(x_aug, w_in, a_norm, w_stack, b_stack, selm, seld)


# ------------------------------ JAX glue ------------------------------------

def build_gcn_norm(edge_index, num_nodes, num_nodes_pad):
    """to_undirected + self loops + symmetric normalization (dense, padded)."""
    src, dst = edge_index[0], edge_index[1]
    a = jnp.zeros((num_nodes, num_nodes), jnp.float32)
    a = a.at[src, dst].set(1.0)
    a = a.at[dst, src].set(1.0)            # to_undirected (coalesced)
    diag = jnp.arange(num_nodes)
    a = a.at[diag, diag].set(1.0)          # self loops, fill=1
    deg = a.sum(axis=1)
    dinv = jnp.where(deg > 0, 1.0 / jnp.sqrt(deg), 0.0)
    a_norm = dinv[:, None] * a * dinv[None, :]
    pad = num_nodes_pad - num_nodes
    return jnp.pad(a_norm, ((0, pad), (0, pad)))   # padded rows/cols are zero


def init_params(key, in_dims, hidden, num_heads, num_layers):
    ks = jax.random.split(key, 64)
    i = 0
    params = {"lin": {}, "convs": []}
    for nt, d_in in in_dims.items():
        w = 0.1 * jax.random.normal(ks[i], (d_in, hidden), jnp.float32); i += 1
        b = 0.1 * jax.random.normal(ks[i], (hidden,), jnp.float32); i += 1
        params["lin"][nt] = (w, b)
    for _ in range(num_layers):            # HGT.convs: num_layers GCNII blocks
        block = []
        for _ in range(num_heads):         # GCNII depth = num_heads GCNConv layers
            w = 0.1 * jax.random.normal(ks[i], (hidden, hidden), jnp.float32); i += 1
            b = 0.1 * jax.random.normal(ks[i], (hidden,), jnp.float32); i += 1
            block.append((w, b))
        params["convs"].append(block)
    # self.fc is unused on this forward branch (kept for parity)
    params["fc"] = (0.1 * jax.random.normal(ks[i], (2 * hidden * num_layers, 1)),
                    jnp.zeros((1,), jnp.float32))
    return params


def hgt_forward(params, x_dict, edge_index_dict, edge_index):
    node_types = list(x_dict.keys())       # insertion order: ['n1', 'n2']
    nt1, nt2 = node_types
    x1, x2 = x_dict[nt1], x_dict[nt2]
    n1, in1 = x1.shape
    n2, in2 = x2.shape
    n = n1 + n2

    hidden = params["lin"][nt1][0].shape[1]
    num_layers = len(params["convs"])
    num_heads = len(params["convs"][0])
    l_total = num_layers * num_heads

    n_pad = _round_up(n, 8)
    h_pad = _round_up(hidden, 128)
    k_in = in1 + in2 + 2                   # block-diag features + 2 bias indicators
    k_in_pad = _round_up(k_in, 128)

    # 1) both lin_dict[node_type](x).relu_() fused as one padded f32 matmul
    w1, b1 = params["lin"][nt1]
    w2, b2 = params["lin"][nt2]
    x_aug = jnp.zeros((n_pad, k_in_pad), jnp.float32)
    x_aug = x_aug.at[:n1, :in1].set(x1)
    x_aug = x_aug.at[n1:n, in1:in1 + in2].set(x2)
    x_aug = x_aug.at[:n1, in1 + in2].set(1.0)        # bias indicator for n1 rows
    x_aug = x_aug.at[n1:n, in1 + in2 + 1].set(1.0)   # bias indicator for n2 rows
    w_in = jnp.zeros((k_in_pad, h_pad), jnp.float32)
    w_in = w_in.at[:in1, :hidden].set(w1)
    w_in = w_in.at[in1:in1 + in2, :hidden].set(w2)
    w_in = w_in.at[in1 + in2, :hidden].set(b1)
    w_in = w_in.at[in1 + in2 + 1, :hidden].set(b2)

    # 2) merged graph: clone + offset dst indices, to_undirected, sym-normalize
    #    (reference also only uses the first edge type of edge_index_dict)
    first_etype = next(iter(edge_index_dict))
    e_all = edge_index_dict[first_etype]
    e_all = e_all.at[1, :].add(n1)
    a_norm = build_gcn_norm(e_all, n, n_pad)          # kept f32 for accuracy

    # stacked, zero-padded GCN weights [L_total, H_pad, H_pad] + biases (f32)
    w_stack = jnp.zeros((l_total, h_pad, h_pad), jnp.float32)
    b_stack = jnp.zeros((l_total, 1, h_pad), jnp.float32)
    li = 0
    for block in params["convs"]:
        for (w, b) in block:
            w_stack = w_stack.at[li, :hidden, :hidden].set(w)
            b_stack = b_stack.at[li, 0, :hidden].set(b)
            li += 1

    # 4) edge gathers expressed as one-hot row selectors so the final
    #    (Em @ Ed^T)[m_index, d_index] is computed edge-wise inside the kernel.
    m_index = edge_index[0]
    d_index = edge_index[1]
    e = m_index.shape[0]
    e_rows = _round_up(e, 8)
    selm = jnp.zeros((e_rows, n_pad), jnp.float32)
    selm = selm.at[jnp.arange(e), m_index].set(1.0)
    seld = jnp.zeros((e_rows, n_pad), jnp.float32)
    seld = seld.at[jnp.arange(e), n1 + d_index].set(1.0)

    # cost estimate from true (unpadded) dims
    flops = int(2 * (n1 * in1 + n2 * in2) * hidden
                + l_total * (2 * n * hidden * hidden + 2 * n * n * hidden)
                + num_layers * (2 * 2 * e * n * hidden + 2 * e * hidden))
    bytes_accessed = int(4 * (x1.size + x2.size + n * n
                              + l_total * (hidden * hidden + hidden)
                              + (in1 + in2 + 2) * hidden + 2 * e * n + e))
    cost = pl.CostEstimate(flops=flops, transcendentals=0,
                           bytes_accessed=bytes_accessed)

    y = fused_hgt_forward(
        x_aug, w_in, a_norm, w_stack.astype(jnp.bfloat16), b_stack,
        selm, seld, num_layers, num_heads, cost)

    # 3) Dropout(0.5) in eval mode is identity.
    # TODO(synk): training-mode dropout masks are omitted (eval semantics only).
    return y[:e]


# ------------------------------- main ---------------------------------------

if __name__ == "__main__":
    key = jax.random.PRNGKey(0)
    k = jax.random.split(key, 8)

    N1, N2 = 12, 10
    IN1, IN2 = 16, 8
    HIDDEN, NUM_HEADS, NUM_LAYERS = 32, 4, 2
    E_HET, E_SCORE = 20, 8

    x_dict = {
        "n1": jax.random.normal(k[0], (N1, IN1), jnp.float32),
        "n2": jax.random.normal(k[1], (N2, IN2), jnp.float32),
    }
    het_edges = jnp.stack([
        jax.random.randint(k[2], (E_HET,), 0, N1),
        jax.random.randint(k[3], (E_HET,), 0, N2),
    ])
    edge_index_dict = {("n1", "to", "n2"): het_edges}
    edge_index = jnp.stack([
        jax.random.randint(k[4], (E_SCORE,), 0, N1),
        jax.random.randint(k[5], (E_SCORE,), 0, N2),
    ])

    params = init_params(k[6], {"n1": IN1, "n2": IN2}, HIDDEN, NUM_HEADS, NUM_LAYERS)

    y = hgt_forward(params, x_dict, edge_index_dict, edge_index)
    y = jax.block_until_ready(y)
    assert y.shape == (E_SCORE, 1), y.shape
    assert jnp.all(jnp.isfinite(y))
    print("KERNEL_OK")
</pallas_src>

<mosaic_0001>
module attributes {stable_mosaic.version = 11 : i64} {
  func.func @_fused_hgt_kernel(%arg0: i32, %arg1: memref<24x128xf32, #tpu.memory_space<vmem>>, %arg2: memref<128x128xf32, #tpu.memory_space<vmem>>, %arg3: memref<24x24xf32, #tpu.memory_space<vmem>>, %arg4: memref<8x128x128xbf16, #tpu.memory_space<vmem>>, %arg5: memref<8x1x128xf32, #tpu.memory_space<vmem>>, %arg6: memref<8x24xf32, #tpu.memory_space<vmem>>, %arg7: memref<8x24xf32, #tpu.memory_space<vmem>>, %arg8: memref<8x1xf32, #tpu.memory_space<vmem>>) attributes {dimension_semantics = [#tpu.dimension_semantics<arbitrary>], iteration_bounds = array<i64: 1>, scalar_prefetch = 0 : i64, scratch_operands = 0 : i64, tpu.core_type = #tpu.core_type<tc>, window_params = [{pipeline_mode = #tpu.pipeline_mode<synchronous>, transform_indices = @transform_0, window_bounds = array<i64: 24, 128>}, {pipeline_mode = #tpu.pipeline_mode<synchronous>, transform_indices = @transform_1, window_bounds = array<i64: 128, 128>}, {pipeline_mode = #tpu.pipeline_mode<synchronous>, transform_indices = @transform_2, window_bounds = array<i64: 24, 24>}, {pipeline_mode = #tpu.pipeline_mode<synchronous>, transform_indices = @transform_3, window_bounds = array<i64: 8, 128, 128>}, {pipeline_mode = #tpu.pipeline_mode<synchronous>, transform_indices = @transform_4, window_bounds = array<i64: 8, 1, 128>}, {pipeline_mode = #tpu.pipeline_mode<synchronous>, transform_indices = @transform_5, window_bounds = array<i64: 8, 24>}, {pipeline_mode = #tpu.pipeline_mode<synchronous>, transform_indices = @transform_6, window_bounds = array<i64: 8, 24>}, {pipeline_mode = #tpu.pipeline_mode<synchronous>, transform_indices = @transform_7, window_bounds = array<i64: 8, 1>}]} {
    %c0 = arith.constant 0 : index
    %c0_0 = arith.constant 0 : index
    %0 = vector.load %arg1[%c0, %c0_0] : memref<24x128xf32, #tpu.memory_space<vmem>>, vector<24x128xf32>
    %c0_1 = arith.constant 0 : index
    %c0_2 = arith.constant 0 : index
    %1 = vector.load %arg2[%c0_1, %c0_2] : memref<128x128xf32, #tpu.memory_space<vmem>>, vector<128x128xf32>
    %cst = arith.constant dense<0.000000e+00> : vector<24x128xf32>
    %2 = tpu.matmul %0, %1, %cst {dimension_numbers = #tpu.dot_dimension_numbers<[1], [0], [0], [1], [0, 0, 1, 1], [], []>} : vector<24x128xf32>, vector<128x128xf32>, vector<24x128xf32> -> vector<24x128xf32>
    %cst_3 = arith.constant 0.000000e+00 : f32
    %3 = vector.broadcast %cst_3 : f32 to vector<24x128xf32>
    %4 = arith.maximumf %2, %3 : vector<24x128xf32>
    %c0_4 = arith.constant 0 : index
    %c0_5 = arith.constant 0 : index
    %5 = vector.load %arg3[%c0_4, %c0_5] : memref<24x24xf32, #tpu.memory_space<vmem>>, vector<24x24xf32>
    %c0_6 = arith.constant 0 : index
    %c0_7 = arith.constant 0 : index
    %6 = vector.load %arg6[%c0_6, %c0_7] : memref<8x24xf32, #tpu.memory_space<vmem>>, vector<8x24xf32>
    %c0_8 = arith.constant 0 : index
    %c0_9 = arith.constant 0 : index
    %7 = vector.load %arg7[%c0_8, %c0_9] : memref<8x24xf32, #tpu.memory_space<vmem>>, vector<8x24xf32>
    %cst_10 = arith.constant 0.000000e+00 : f32
    %8 = vector.broadcast %cst_10 : f32 to vector<8x1xf32>
    %c0_i32 = arith.constant 0 : i32
    %c0_i32_11 = arith.constant 0 : i32
    %9 = arith.addi %c0_i32_11, %c0_i32 : i32
    %10 = arith.index_cast %9 : i32 to index
    %c0_12 = arith.constant 0 : index
    %c0_13 = arith.constant 0 : index
    %11 = vector.load %arg4[%10, %c0_12, %c0_13] : memref<8x128x128xbf16, #tpu.memory_space<vmem>>, vector<1x128x128xbf16>
    %12 = vector.shape_cast %11 : vector<1x128x128xbf16> to vector<128x128xbf16>
    %13 = arith.index_cast %9 : i32 to index
    %c0_14 = arith.constant 0 : index
    %c0_15 = arith.constant 0 : index
    %14 = vector.load %arg5[%13, %c0_14, %c0_15] : memref<8x1x128xf32, #tpu.memory_space<vmem>>, vector<1x1x128xf32>
    %15 = vector.shape_cast %14 : vector<1x1x128xf32> to vector<1x128xf32>
    %16 = arith.truncf %4 : vector<24x128xf32> to vector<24x128xbf16>
    %cst_16 = arith.constant dense<0.000000e+00> : vector<24x128xf32>
    %17 = tpu.matmul %16, %12, %cst_16 {dimension_numbers = #tpu.dot_dimension_numbers<[1], [0], [0], [1], [0, 0, 1, 1], [], []>} : vector<24x128xbf16>, vector<128x128xbf16>, vector<24x128xf32> -> vector<24x128xf32>
    %cst_17 = arith.constant dense<0.000000e+00> : vector<24x128xf32>
    %18 = tpu.matmul %5, %17, %cst_17 {dimension_numbers = #tpu.dot_dimension_numbers<[1], [0], [0], [1], [0, 0, 1, 1], [], []>} : vector<24x24xf32>, vector<24x128xf32>, vector<24x128xf32> -> vector<24x128xf32>
    %19 = vector.broadcast %15 : vector<1x128xf32> to vector<24x128xf32>
    %20 = arith.addf %18, %19 : vector<24x128xf32>
    %c1_i32 = arith.constant 1 : i32
    %c0_i32_18 = arith.constant 0 : i32
    %21 = arith.addi %c0_i32_18, %c1_i32 : i32
    %22 = arith.index_cast %21 : i32 to index
    %c0_19 = arith.constant 0 : index
    %c0_20 = arith.constant 0 : index
    %23 = vector.load %arg4[%22, %c0_19, %c0_20] : memref<8x128x128xbf16, #tpu.memory_space<vmem>>, vector<1x128x128xbf16>
    %24 = vector.shape_cast %23 : vector<1x128x128xbf16> to vector<128x128xbf16>
    %25 = arith.index_cast %21 : i32 to index
    %c0_21 = arith.constant 0 : index
    %c0_22 = arith.constant 0 : index
    %26 = vector.load %arg5[%25, %c0_21, %c0_22] : memref<8x1x128xf32, #tpu.memory_space<vmem>>, vector<1x1x128xf32>
    %27 = vector.shape_cast %26 : vector<1x1x128xf32> to vector<1x128xf32>
    %28 = arith.truncf %20 : vector<24x128xf32> to vector<24x128xbf16>
    %cst_23 = arith.constant dense<0.000000e+00> : vector<24x128xf32>
    %29 = tpu.matmul %28, %24, %cst_23 {dimension_numbers = #tpu.dot_dimension_numbers<[1], [0], [0], [1], [0, 0, 1, 1], [], []>} : vector<24x128xbf16>, vector<128x128xbf16>, vector<24x128xf32> -> vector<24x128xf32>
    %cst_24 = arith.constant dense<0.000000e+00> : vector<24x128xf32>
    %30 = tpu.matmul %5, %29, %cst_24 {dimension_numbers = #tpu.dot_dimension_numbers<[1], [0], [0], [1], [0, 0, 1, 1], [], []>} : vector<24x24xf32>, vector<24x128xf32>, vector<24x128xf32> -> vector<24x128xf32>
    %31 = vector.broadcast %27 : vector<1x128xf32> to vector<24x128xf32>
    %32 = arith.addf %30, %31 : vector<24x128xf32>
    %c2_i32 = arith.constant 2 : i32
    %c0_i32_25 = arith.constant 0 : i32
    %33 = arith.addi %c0_i32_25, %c2_i32 : i32
    %34 = arith.index_cast %33 : i32 to index
    %c0_26 = arith.constant 0 : index
    %c0_27 = arith.constant 0 : index
    %35 = vector.load %arg4[%34, %c0_26, %c0_27] : memref<8x128x128xbf16, #tpu.memory_space<vmem>>, vector<1x128x128xbf16>
    %36 = vector.shape_cast %35 : vector<1x128x128xbf16> to vector<128x128xbf16>
    %37 = arith.index_cast %33 : i32 to index
    %c0_28 = arith.constant 0 : index
    %c0_29 = arith.constant 0 : index
    %38 = vector.load %arg5[%37, %c0_28, %c0_29] : memref<8x1x128xf32, #tpu.memory_space<vmem>>, vector<1x1x128xf32>
    %39 = vector.shape_cast %38 : vector<1x1x128xf32> to vector<1x128xf32>
    %40 = arith.truncf %32 : vector<24x128xf32> to vector<24x128xbf16>
    %cst_30 = arith.constant dense<0.000000e+00> : vector<24x128xf32>
    %41 = tpu.matmul %40, %36, %cst_30 {dimension_numbers = #tpu.dot_dimension_numbers<[1], [0], [0], [1], [0, 0, 1, 1], [], []>} : vector<24x128xbf16>, vector<128x128xbf16>, vector<24x128xf32> -> vector<24x128xf32>
    %cst_31 = arith.constant dense<0.000000e+00> : vector<24x128xf32>
    %42 = tpu.matmul %5, %41, %cst_31 {dimension_numbers = #tpu.dot_dimension_numbers<[1], [0], [0], [1], [0, 0, 1, 1], [], []>} : vector<24x24xf32>, vector<24x128xf32>, vector<24x128xf32> -> vector<24x128xf32>
    %43 = vector.broadcast %39 : vector<1x128xf32> to vector<24x128xf32>
    %44 = arith.addf %42, %43 : vector<24x128xf32>
    %c3_i32 = arith.constant 3 : i32
    %c0_i32_32 = arith.constant 0 : i32
    %45 = arith.addi %c0_i32_32, %c3_i32 : i32
    %46 = arith.index_cast %45 : i32 to index
    %c0_33 = arith.constant 0 : index
    %c0_34 = arith.constant 0 : index
    %47 = vector.load %arg4[%46, %c0_33, %c0_34] : memref<8x128x128xbf16, #tpu.memory_space<vmem>>, vector<1x128x128xbf16>
    %48 = vector.shape_cast %47 : vector<1x128x128xbf16> to vector<128x128xbf16>
    %49 = arith.index_cast %45 : i32 to index
    %c0_35 = arith.constant 0 : index
    %c0_36 = arith.constant 0 : index
    %50 = vector.load %arg5[%49, %c0_35, %c0_36] : memref<8x1x128xf32, #tpu.memory_space<vmem>>, vector<1x1x128xf32>
    %51 = vector.shape_cast %50 : vector<1x1x128xf32> to vector<1x128xf32>
    %52 = arith.truncf %44 : vector<24x128xf32> to vector<24x128xbf16>
    %cst_37 = arith.constant dense<0.000000e+00> : vector<24x128xf32>
    %53 = tpu.matmul %52, %48, %cst_37 {dimension_numbers = #tpu.dot_dimension_numbers<[1], [0], [0], [1], [0, 0, 1, 1], [], []>} : vector<24x128xbf16>, vector<128x128xbf16>, vector<24x128xf32> -> vector<24x128xf32>
    %cst_38 = arith.constant dense<0.000000e+00> : vector<24x128xf32>
    %54 = tpu.matmul %5, %53, %cst_38 {dimension_numbers = #tpu.dot_dimension_numbers<[1], [0], [0], [1], [0, 0, 1, 1], [], []>} : vector<24x24xf32>, vector<24x128xf32>, vector<24x128xf32> -> vector<24x128xf32>
    %55 = vector.broadcast %51 : vector<1x128xf32> to vector<24x128xf32>
    %56 = arith.addf %54, %55 : vector<24x128xf32>
    %c4_i32 = arith.constant 4 : i32
    %cst_39 = arith.constant dense<0.000000e+00> : vector<8x128xf32>
    %57 = tpu.matmul %6, %56, %cst_39 {dimension_numbers = #tpu.dot_dimension_numbers<[1], [0], [0], [1], [0, 0, 1, 1], [], []>} : vector<8x24xf32>, vector<24x128xf32>, vector<8x128xf32> -> vector<8x128xf32>
    %cst_40 = arith.constant dense<0.000000e+00> : vector<8x128xf32>
    %58 = tpu.matmul %7, %56, %cst_40 {dimension_numbers = #tpu.dot_dimension_numbers<[1], [0], [0], [1], [0, 0, 1, 1], [], []>} : vector<8x24xf32>, vector<24x128xf32>, vector<8x128xf32> -> vector<8x128xf32>
    %59 = arith.mulf %57, %58 : vector<8x128xf32>
    %cst_41 = arith.constant dense<0.000000e+00> : vector<8xf32>
    %60 = vector.multi_reduction <add>, %59, %cst_41 [1] : vector<8x128xf32> to vector<8xf32>
    %61 = vector.shape_cast %60 : vector<8xf32> to vector<8x1xf32>
    %62 = arith.addf %8, %61 : vector<8x1xf32>
    %c0_i32_42 = arith.constant 0 : i32
    %c4_i32_43 = arith.constant 4 : i32
    %63 = arith.addi %c4_i32_43, %c0_i32_42 : i32
    %64 = arith.index_cast %63 : i32 to index
    %c0_44 = arith.constant 0 : index
    %c0_45 = arith.constant 0 : index
    %65 = vector.load %arg4[%64, %c0_44, %c0_45] : memref<8x128x128xbf16, #tpu.memory_space<vmem>>, vector<1x128x128xbf16>
    %66 = vector.shape_cast %65 : vector<1x128x128xbf16> to vector<128x128xbf16>
    %67 = arith.index_cast %63 : i32 to index
    %c0_46 = arith.constant 0 : index
    %c0_47 = arith.constant 0 : index
    %68 = vector.load %arg5[%67, %c0_46, %c0_47] : memref<8x1x128xf32, #tpu.memory_space<vmem>>, vector<1x1x128xf32>
    %69 = vector.shape_cast %68 : vector<1x1x128xf32> to vector<1x128xf32>
    %70 = arith.truncf %56 : vector<24x128xf32> to vector<24x128xbf16>
    %cst_48 = arith.constant dense<0.000000e+00> : vector<24x128xf32>
    %71 = tpu.matmul %70, %66, %cst_48 {dimension_numbers = #tpu.dot_dimension_numbers<[1], [0], [0], [1], [0, 0, 1, 1], [], []>} : vector<24x128xbf16>, vector<128x128xbf16>, vector<24x128xf32> -> vector<24x128xf32>
    %cst_49 = arith.constant dense<0.000000e+00> : vector<24x128xf32>
    %72 = tpu.matmul %5, %71, %cst_49 {dimension_numbers = #tpu.dot_dimension_numbers<[1], [0], [0], [1], [0, 0, 1, 1], [], []>} : vector<24x24xf32>, vector<24x128xf32>, vector<24x128xf32> -> vector<24x128xf32>
    %73 = vector.broadcast %69 : vector<1x128xf32> to vector<24x128xf32>
    %74 = arith.addf %72, %73 : vector<24x128xf32>
    %c1_i32_50 = arith.constant 1 : i32
    %c4_i32_51 = arith.constant 4 : i32
    %75 = arith.addi %c4_i32_51, %c1_i32_50 : i32
    %76 = arith.index_cast %75 : i32 to index
    %c0_52 = arith.constant 0 : index
    %c0_53 = arith.constant 0 : index
    %77 = vector.load %arg4[%76, %c0_52, %c0_53] : memref<8x128x128xbf16, #tpu.memory_space<vmem>>, vector<1x128x128xbf16>
    %78 = vector.shape_cast %77 : vector<1x128x128xbf16> to vector<128x128xbf16>
    %79 = arith.index_cast %75 : i32 to index
    %c0_54 = arith.constant 0 : index
    %c0_55 = arith.constant 0 : index
    %80 = vector.load %arg5[%79, %c0_54, %c0_55] : memref<8x1x128xf32, #tpu.memory_space<vmem>>, vector<1x1x128xf32>
    %81 = vector.shape_cast %80 : vector<1x1x128xf32> to vector<1x128xf32>
    %82 = arith.truncf %74 : vector<24x128xf32> to vector<24x128xbf16>
    %cst_56 = arith.constant dense<0.000000e+00> : vector<24x128xf32>
    %83 = tpu.matmul %82, %78, %cst_56 {dimension_numbers = #tpu.dot_dimension_numbers<[1], [0], [0], [1], [0, 0, 1, 1], [], []>} : vector<24x128xbf16>, vector<128x128xbf16>, vector<24x128xf32> -> vector<24x128xf32>
    %cst_57 = arith.constant dense<0.000000e+00> : vector<24x128xf32>
    %84 = tpu.matmul %5, %83, %cst_57 {dimension_numbers = #tpu.dot_dimension_numbers<[1], [0], [0], [1], [0, 0, 1, 1], [], []>} : vector<24x24xf32>, vector<24x128xf32>, vector<24x128xf32> -> vector<24x128xf32>
    %85 = vector.broadcast %81 : vector<1x128xf32> to vector<24x128xf32>
    %86 = arith.addf %84, %85 : vector<24x128xf32>
    %c2_i32_58 = arith.constant 2 : i32
    %c4_i32_59 = arith.constant 4 : i32
    %87 = arith.addi %c4_i32_59, %c2_i32_58 : i32
    %88 = arith.index_cast %87 : i32 to index
    %c0_60 = arith.constant 0 : index
    %c0_61 = arith.constant 0 : index
    %89 = vector.load %arg4[%88, %c0_60, %c0_61] : memref<8x128x128xbf16, #tpu.memory_space<vmem>>, vector<1x128x128xbf16>
    %90 = vector.shape_cast %89 : vector<1x128x128xbf16> to vector<128x128xbf16>
    %91 = arith.index_cast %87 : i32 to index
    %c0_62 = arith.constant 0 : index
    %c0_63 = arith.constant 0 : index
    %92 = vector.load %arg5[%91, %c0_62, %c0_63] : memref<8x1x128xf32, #tpu.memory_space<vmem>>, vector<1x1x128xf32>
    %93 = vector.shape_cast %92 : vector<1x1x128xf32> to vector<1x128xf32>
    %94 = arith.truncf %86 : vector<24x128xf32> to vector<24x128xbf16>
    %cst_64 = arith.constant dense<0.000000e+00> : vector<24x128xf32>
    %95 = tpu.matmul %94, %90, %cst_64 {dimension_numbers = #tpu.dot_dimension_numbers<[1], [0], [0], [1], [0, 0, 1, 1], [], []>} : vector<24x128xbf16>, vector<128x128xbf16>, vector<24x128xf32> -> vector<24x128xf32>
    %cst_65 = arith.constant dense<0.000000e+00> : vector<24x128xf32>
    %96 = tpu.matmul %5, %95, %cst_65 {dimension_numbers = #tpu.dot_dimension_numbers<[1], [0], [0], [1], [0, 0, 1, 1], [], []>} : vector<24x24xf32>, vector<24x128xf32>, vector<24x128xf32> -> vector<24x128xf32>
    %97 = vector.broadcast %93 : vector<1x128xf32> to vector<24x128xf32>
    %98 = arith.addf %96, %97 : vector<24x128xf32>
    %c3_i32_66 = arith.constant 3 : i32
    %c4_i32_67 = arith.constant 4 : i32
    %99 = arith.addi %c4_i32_67, %c3_i32_66 : i32
    %100 = arith.index_cast %99 : i32 to index
    %c0_68 = arith.constant 0 : index
    %c0_69 = arith.constant 0 : index
    %101 = vector.load %arg4[%100, %c0_68, %c0_69] : memref<8x128x128xbf16, #tpu.memory_space<vmem>>, vector<1x128x128xbf16>
    %102 = vector.shape_cast %101 : vector<1x128x128xbf16> to vector<128x128xbf16>
    %103 = arith.index_cast %99 : i32 to index
    %c0_70 = arith.constant 0 : index
    %c0_71 = arith.constant 0 : index
    %104 = vector.load %arg5[%103, %c0_70, %c0_71] : memref<8x1x128xf32, #tpu.memory_space<vmem>>, vector<1x1x128xf32>
    %105 = vector.shape_cast %104 : vector<1x1x128xf32> to vector<1x128xf32>
    %106 = arith.truncf %98 : vector<24x128xf32> to vector<24x128xbf16>
    %cst_72 = arith.constant dense<0.000000e+00> : vector<24x128xf32>
    %107 = tpu.matmul %106, %102, %cst_72 {dimension_numbers = #tpu.dot_dimension_numbers<[1], [0], [0], [1], [0, 0, 1, 1], [], []>} : vector<24x128xbf16>, vector<128x128xbf16>, vector<24x128xf32> -> vector<24x128xf32>
    %cst_73 = arith.constant dense<0.000000e+00> : vector<24x128xf32>
    %108 = tpu.matmul %5, %107, %cst_73 {dimension_numbers = #tpu.dot_dimension_numbers<[1], [0], [0], [1], [0, 0, 1, 1], [], []>} : vector<24x24xf32>, vector<24x128xf32>, vector<24x128xf32> -> vector<24x128xf32>
    %109 = vector.broadcast %105 : vector<1x128xf32> to vector<24x128xf32>
    %110 = arith.addf %108, %109 : vector<24x128xf32>
    %c4_i32_74 = arith.constant 4 : i32
    %cst_75 = arith.constant dense<0.000000e+00> : vector<8x128xf32>
    %111 = tpu.matmul %6, %110, %cst_75 {dimension_numbers = #tpu.dot_dimension_numbers<[1], [0], [0], [1], [0, 0, 1, 1], [], []>} : vector<8x24xf32>, vector<24x128xf32>, vector<8x128xf32> -> vector<8x128xf32>
    %cst_76 = arith.constant dense<0.000000e+00> : vector<8x128xf32>
    %112 = tpu.matmul %7, %110, %cst_76 {dimension_numbers = #tpu.dot_dimension_numbers<[1], [0], [0], [1], [0, 0, 1, 1], [], []>} : vector<8x24xf32>, vector<24x128xf32>, vector<8x128xf32> -> vector<8x128xf32>
    %113 = arith.mulf %111, %112 : vector<8x128xf32>
    %cst_77 = arith.constant dense<0.000000e+00> : vector<8xf32>
    %114 = vector.multi_reduction <add>, %113, %cst_77 [1] : vector<8x128xf32> to vector<8xf32>
    %115 = vector.shape_cast %114 : vector<8xf32> to vector<8x1xf32>
    %116 = arith.addf %62, %115 : vector<8x1xf32>
    %c0_78 = arith.constant 0 : index
    %c0_79 = arith.constant 0 : index
    %117 = vector.load %arg8[%c0_78, %c0_79] : memref<8x1xf32, #tpu.memory_space<vmem>>, vector<8x1xf32>
    tpu.vector_store %arg8[%c0_78, %c0_79], %116 {strides = array<i32>} : memref<8x1xf32, #tpu.memory_space<vmem>>, vector<8x1xf32>,
    return
  }
  func.func @transform_0(%arg0: i32) -> (i32, i32) {
    %c0_i32 = arith.constant 0 : i32
    %c0_i32_0 = arith.constant 0 : i32
    %c0_i32_1 = arith.constant 0 : i32
    return %c0_i32, %c0_i32_0 : i32, i32
  }
  func.func @transform_1(%arg0: i32) -> (i32, i32) {
    %c0_i32 = arith.constant 0 : i32
    %c0_i32_0 = arith.constant 0 : i32
    %c0_i32_1 = arith.constant 0 : i32
    return %c0_i32, %c0_i32_0 : i32, i32
  }
  func.func @transform_2(%arg0: i32) -> (i32, i32) {
    %c0_i32 = arith.constant 0 : i32
    %c0_i32_0 = arith.constant 0 : i32
    %c0_i32_1 = arith.constant 0 : i32
    return %c0_i32, %c0_i32_0 : i32, i32
  }
  func.func @transform_3(%arg0: i32) -> (i32, i32, i32) {
    %c0_i32 = arith.constant 0 : i32
    %c0_i32_0 = arith.constant 0 : i32
    %c0_i32_1 = arith.constant 0 : i32
    %c0_i32_2 = arith.constant 0 : i32
    return %c0_i32, %c0_i32_0, %c0_i32_1 : i32, i32, i32
  }
  func.func @transform_4(%arg0: i32) -> (i32, i32, i32) {
    %c0_i32 = arith.constant 0 : i32
    %c0_i32_0 = arith.constant 0 : i32
    %c0_i32_1 = arith.constant 0 : i32
    %c0_i32_2 = arith.constant 0 : i32
    return %c0_i32, %c0_i32_0, %c0_i32_1 : i32, i32, i32
  }
  func.func @transform_5(%arg0: i32) -> (i32, i32) {
    %c0_i32 = arith.constant 0 : i32
    %c0_i32_0 = arith.constant 0 : i32
    %c0_i32_1 = arith.constant 0 : i32
    return %c0_i32, %c0_i32_0 : i32, i32
  }
  func.func @transform_6(%arg0: i32) -> (i32, i32) {
    %c0_i32 = arith.constant 0 : i32
    %c0_i32_0 = arith.constant 0 : i32
    %c0_i32_1 = arith.constant 0 : i32
    return %c0_i32, %c0_i32_0 : i32, i32
  }
  func.func @transform_7(%arg0: i32) -> (i32, i32) {
    %c0_i32 = arith.constant 0 : i32
    %c0_i32_0 = arith.constant 0 : i32
    %c0_i32_1 = arith.constant 0 : i32
    return %c0_i32, %c0_i32_0 : i32, i32
  }
}

</mosaic_0001>

<bundles_post_ra>
// kernel: tpu_custom_call.1
= control target key start
LH: loop header
LB: loop body
LE: loop exit
PB: predicated region body
PF: predicated region fallthrough
CT: control target
= control target key end

     0   :  { %12 = vsyncpa [#allocation3], 0  ;;  %s3339_s0 = inlined_call_operand.hbm [shape: f32[24,128], index: 0, kind: input, shape index: {}]   ;;  %s3340_s1 = inlined_call_operand.hbm [shape: f32[128,128], index: 1, kind: input, shape index: {}]   ;;  %s3341_s2 = inlined_call_operand.hbm [shape: f32[24,24], index: 2, kind: input, shape index: {}]   ;;  %s3342_s3 = inlined_call_operand.hbm [shape: bf16[8,128,128], index: 3, kind: input, shape index: {}]   ;;  %s3343_s4 = inlined_call_operand.vmem [shape: f32[8,1,128], index: 4, kind: input, shape index: {}]   ;;  %s3344_s5 = inlined_call_operand.vmem [shape: f32[8,24], index: 5, kind: input, shape index: {}]   ;;  %s3345_s6 = inlined_call_operand.hbm [shape: f32[8,24], index: 6, kind: input, shape index: {}]   ;;  %s3346_s7 = inlined_call_operand.vmem [shape: f32[8,1], index: 7, kind: output, shape index: {}]  }
   0x1   :  { %13 = vsyncpa [#allocation5], 0 }
   0x2   :  { %14 = vsyncpa [#allocation8], 0  ;;  %s3014_s24 = smov [#allocation4]   ;;  %s3015_s26 = smov [#allocation7]  }
   0x3   :  { %s32_s25 = sshll.u32 %s3014_s24, 4  ;;  %s56_s27 = sshll.u32 %s3015_s26, 4  ;;  %s33_s25 = int_to_ptr.vmem [resolvable:$true] %s32_s25  ;;  %s3066_s27 = int_to_ptr.vmem [resolvable:$true] %s56_s27 }
   0x4   :  { %s2898_s30 = scalar_lea.hbm %s3340_s1, 2048 }
   0x5   :  { %p2899_p0 = scmp.ne.s32.totalorder %s3340_s1, %s2898_s30  ;;  %p2902_p1 = scmp.lt.u32.totalorder %s2898_s30, %s3340_s1 }
   0x7   :  { %p2904_p2 = pnand %p2902_p1, %p2899_p0 }
   0x9   :  { %2907 = shalt.err (!%p2904_p2)
}
   0xa   :  { %s2908_s12 = scalar_lea.vmem %s33_s25, 2048  ;;  %p2913_p4 = scmp.lt.s32.totalorder %s33_s25, %s33_s25 }
   0xb   :  { %p2909_p3 = scmp.ne.s32.totalorder %s33_s25, %s2908_s12  ;;  %p2914_p5 = scmp.lt.s32.totalorder %s2908_s12, %s2908_s12 }
   0xd   :  { %p2915_p6 = por %p2914_p5, %p2913_p4 }
   0xf   :  { %p2916_p7 = pnand %p2915_p6, %p2909_p3 }
  0x11   :  { %2919 = shalt.err (!%p2916_p7)
}
  0x12   :  { %s3016_s13 = smov 128   ;;  %s3017_s14 = smov 8  }
  0x13   :  { %38 = dma.hbm_to_vmem [thread:$0]  %s3340_s1, 2048, %s33_s25, [#allocation5], %s3016_s13, %s3016_s13, %s3017_s14  }
  0x14   :  { %s2920_s19 = scalar_lea.hbm %s3342_s3, 8192 }
  0x15   :  { %p2921_p8 = scmp.ne.s32.totalorder %s3342_s3, %s2920_s19  ;;  %p2924_p9 = scmp.lt.u32.totalorder %s2920_s19, %s3342_s3 }
  0x17   :  { %p2926_p10 = pnand %p2924_p9, %p2921_p8 }
  0x19   :  { %2929 = shalt.err (!%p2926_p10)
}
  0x1a   :  { %s2930_s24 = scalar_lea.vmem %s3066_s27, 8192  ;;  %p2935_p12 = scmp.lt.s32.totalorder %s3066_s27, %s3066_s27 }
  0x1b   :  { %p2931_p11 = scmp.ne.s32.totalorder %s3066_s27, %s2930_s24  ;;  %p2936_p13 = scmp.lt.s32.totalorder %s2930_s24, %s2930_s24 }
  0x1d   :  { %p2937_p0 = por %p2936_p13, %p2935_p12 }
  0x1f   :  { %p2938_p1 = pnand %p2937_p0, %p2931_p11 }
  0x21   :  { %2941 = shalt.err (!%p2938_p1)
}
  0x22   :  { %s3018_s1 = smov 64   ;;  %s3019_s25 = smov 4  }
  0x23   :  { %62 = dma.hbm_to_vmem [thread:$0]  %s3342_s3, 8192, %s3066_s27, [#allocation8], %s3018_s1, %s3018_s1, %s3019_s25  }
  0x24   :  { %s3020_s29 = smov [#allocation2]   ;;  %s3021_s8 = smov [#allocation6]  }
  0x25   :  { %s20_s30 = sshll.u32 %s3020_s29, 4  ;;  %s44_s9 = sshll.u32 %s3021_s8, 4  ;;  %s21_s30 = int_to_ptr.vmem [resolvable:$true] %s20_s30  ;;  %s3100_s9 = int_to_ptr.vmem [resolvable:$true] %s44_s9 }
  0x26   :  { %s2942_s12 = scalar_lea.hbm %s3339_s0, 384 }
  0x27   :  { %p2943_p2 = scmp.ne.s32.totalorder %s3339_s0, %s2942_s12  ;;  %p2946_p3 = scmp.lt.u32.totalorder %s2942_s12, %s3339_s0 }
  0x29   :  { %p2948_p4 = pnand %p2946_p3, %p2943_p2 }
  0x2b   :  { %2951 = shalt.err (!%p2948_p4)
}
  0x2c   :  { %s2952_s3 = scalar_lea.vmem %s21_s30, 384  ;;  %p2957_p6 = scmp.lt.s32.totalorder %s21_s30, %s21_s30 }
  0x2d   :  { %p2953_p5 = scmp.ne.s32.totalorder %s21_s30, %s2952_s3  ;;  %p2958_p7 = scmp.lt.s32.totalorder %s2952_s3, %s2952_s3 }
  0x2f   :  { %p2959_p8 = por %p2958_p7, %p2957_p6 }
  0x31   :  { %p2960_p9 = pnand %p2959_p8, %p2953_p5 }
  0x33   :  { %2963 = shalt.err (!%p2960_p9)
}
  0x34   :  { %26 = dma.hbm_to_vmem [thread:$0]  %s3339_s0, 384, %s21_s30, [#allocation3], %s3016_s13, %s3016_s13, %s3017_s14  }
  0x35   :  { %s2964_s22 = scalar_lea.hbm %s3341_s2, 384 }
  0x36   :  { %p2965_p10 = scmp.ne.s32.totalorder %s3341_s2, %s2964_s22  ;;  %p2968_p11 = scmp.lt.u32.totalorder %s2964_s22, %s3341_s2 }
  0x38   :  { %p2970_p12 = pnand %p2968_p11, %p2965_p10 }
  0x3a   :  { %2973 = shalt.err (!%p2970_p12)
}
  0x3b   :  { %s2974_s26 = scalar_lea.vmem %s3100_s9, 384  ;;  %p2979_p0 = scmp.lt.s32.totalorder %s3100_s9, %s3100_s9 }
  0x3c   :  { %p2975_p13 = scmp.ne.s32.totalorder %s3100_s9, %s2974_s26  ;;  %p2980_p1 = scmp.lt.s32.totalorder %s2974_s26, %s2974_s26 }
  0x3e   :  { %p2981_p2 = por %p2980_p1, %p2979_p0 }
  0x40   :  { %p2982_p3 = pnand %p2981_p2, %p2975_p13 }
  0x42   :  { %2985 = shalt.err (!%p2982_p3)
}
  0x43   :  { %50 = dma.hbm_to_vmem [thread:$0]  %s3341_s2, 384, %s3100_s9, [#allocation5], %s3016_s13, %s3016_s13, %s3017_s14  }
  0x44   :  { %s3022_s29 = smov [#allocation9]   ;;  %s2986_s11 = scalar_lea.hbm %s3345_s6, 128 }
  0x45   :  { %s73_s30 = sshll.u32 %s3022_s29, 4  ;;  %p2987_p4 = scmp.ne.s32.totalorder %s3345_s6, %s2986_s11  ;;  %s74_s30 = int_to_ptr.vmem [resolvable:$true] %s73_s30 }
  0x46   :  { %p2990_p5 = scmp.lt.u32.totalorder %s2986_s11, %s3345_s6 }
  0x48   :  { %p2992_p6 = pnand %p2990_p5, %p2987_p4 }
  0x4a   :  { %2995 = shalt.err (!%p2992_p6)
}
  0x4b   :  { %s2996_s18 = scalar_lea.vmem %s74_s30, 128  ;;  %p3001_p8 = scmp.lt.s32.totalorder %s74_s30, %s74_s30 }
  0x4c   :  { %p2997_p7 = scmp.ne.s32.totalorder %s74_s30, %s2996_s18  ;;  %p3002_p9 = scmp.lt.s32.totalorder %s2996_s18, %s2996_s18 }
  0x4e   :  { %p3003_p10 = por %p3002_p9, %p3001_p8 }
  0x50   :  { %p3004_p11 = pnand %p3003_p10, %p2997_p7 }
  0x52   :  { %3007 = shalt.err (!%p3004_p11)
}
  0x53   :  { %76 = dma.hbm_to_vmem [thread:$0]  %s3345_s6, 128, %s74_s30, [#allocation8]  }
  0x54   :  { %3008 = dma.done.wait [#allocation3], 384  }
  0x55   :  { %3009 = vsyncadd [#allocation3], 4294966912 }
  0x56   :  { %3010 = dma.done.wait [#allocation5], 2432  }
  0x57   :  { %3011 = vsyncadd [#allocation5], 4294964864 }
  0x58   :  { %3012 = dma.done.wait [#allocation8], 8320  }
  0x59   :  { %3013 = vsyncadd [#allocation8], 4294958976  ;;  %v3023_v0 = vmov 0.0|0.0   ;;  %vm3024_vm0 = vmmov 0   ;;  %v3025_v1 = vmov 0.0   ;;  %v96_v2 = vld [vmem:[#allocation4] sm:$0xff] }
  0x5a   :  { %2762 = vmatprep.subr.bf16.mxu0 %v3023_v0  ;;  %2437 = vmatprep.mubr.msk.f32.mxu0 %vm3024_vm0, %v3025_v1  ;;  %v97_v3 = vld [vmem:[#allocation4 + $0x8] sm:$0xff]  ;;  %v98_v4 = vld [vmem:[#allocation4 + $0x10] sm:$0xff]  ;;  %v99_v6 = vld [vmem:[#allocation4 + $0x18] sm:$0xff]  ;;  %vm321_vm1 = vcmask 195584   ;;  %vm2126_vm2 = vcmask 7168  }
  0x5b   :  { %v2763_v5 = vpack.c.bf16 %v97_v3, %v96_v2  ;;  %v2766_v7 = vpack.c.bf16 %v99_v6, %v98_v4  ;;  %v100_v8 = vld [vmem:[#allocation4 + $0x20] sm:$0xff]  ;;  %v101_v9 = vld [vmem:[#allocation4 + $0x28] sm:$0xff]  ;;  %v102_v10 = vld [vmem:[#allocation4 + $0x30] sm:$0xff] }
  0x5c   :  { %v103_v11 = vld [vmem:[#allocation4 + $0x38] sm:$0xff]  ;;  %v2769_v12 = vpack.c.bf16 %v101_v9, %v100_v8  ;;  %v2835_v14 = vld [vmem:[#allocation7 + $0x8] sm:$0xff]   ;;  %v105_v16 = vld [vmem:[#allocation4 + $0x48] sm:$0xff] }
  0x5d   :  { %2764 = vmatpush3.bf16.msra.mxu0 %v2763_v5  ;;  %v2834_v13 = vld [vmem:[#allocation7] sm:$0xff]   ;;  %v104_v15 = vld [vmem:[#allocation4 + $0x40] sm:$0xff]  ;;  %v2772_v17 = vpack.c.bf16 %v103_v11, %v102_v10  ;;  %v2836_v18 = vld [vmem:[#allocation7 + $0x10] sm:$0xff]  }
  0x5e   :  { %2765 = vmatprep.subr.bf16.mxu0 %v3023_v0  ;;  %2446 = vmatprep.subr.bf16.mxu1 %v2834_v13  ;;  %v2837_v19 = vld [vmem:[#allocation7 + $0x18] sm:$0xff]   ;;  %v107_v21 = vld [vmem:[#allocation4 + $0x58] sm:$0xff]  ;;  %v2775_v22 = vpack.c.bf16 %v105_v16, %v104_v15  ;;  %v108_v24 = vld [vmem:[#allocation4 + $0x60] sm:$0xff] }
  0x5f   :  { %2447 = vmatpush3.bf16.msra.mxu1 %v2834_v13  ;;  %v106_v20 = vld [vmem:[#allocation4 + $0x50] sm:$0xff]  ;;  %v2838_v23 = vld [vmem:[#allocation7 + $0x20] sm:$0xff]   ;;  %v109_v25 = vld [vmem:[#allocation4 + $0x68] sm:$0xff] }
  0x60   :  { %2448 = vmatprep.subr.bf16.mxu1 %v2835_v14  ;;  %v2778_v26 = vpack.c.bf16 %v107_v21, %v106_v20  ;;  %v110_v27 = vld [vmem:[#allocation4 + $0x70] sm:$0xff]  ;;  %v111_v28 = vld [vmem:[#allocation4 + $0x78] sm:$0xff]  ;;  %v2781_v29 = vpack.c.bf16 %v109_v25, %v108_v24  ;;  %v93_v31 = vld [vmem:[#allocation2] sm:$0xff] }
  0x61   :  { %2767 = vmatpush3.bf16.msra.mxu0 %v2766_v7  ;;  %v2784_v30 = vpack.c.bf16 %v111_v28, %v110_v27  ;;  %v94_v32 = vld [vmem:[#allocation2 + $0x8] sm:$0xff]  ;;  %v95_v33 = vld [vmem:[#allocation2 + $0x10] sm:$0xff]  ;;  %v2839_v34 = vld [vmem:[#allocation7 + $0x28] sm:$0xff]  }
  0x62   :  { %2768 = vmatprep.subr.bf16.mxu0 %v3023_v0  ;;  %v2840_v35 = vld [vmem:[#allocation7 + $0x30] sm:$0xff]   ;;  %v2841_v36 = vld [vmem:[#allocation7 + $0x38] sm:$0xff]   ;;  %v2842_v48 = vld [vmem:[#allocation7 + $0x40] sm:$0xff]  }
  0x63   :  { %2449 = vmatpush3.bf16.msra.mxu1 %v2835_v14  ;;  %v2843_v49 = vld [vmem:[#allocation7 + $0x48] sm:$0xff]   ;;  %v2844_v50 = vld [vmem:[#allocation7 + $0x50] sm:$0xff]   ;;  %v2845_v51 = vld [vmem:[#allocation7 + $0x58] sm:$0xff]  }
  0x64   :  { %2450 = vmatprep.subr.bf16.mxu1 %v2836_v18  ;;  %v2846_v52 = vld [vmem:[#allocation7 + $0x60] sm:$0xff]   ;;  %v3167_v58 = vld [vmem:[#allocation6] sm:$0xff]  ;;  %v3174_v59 = vld [vmem:[#allocation6 + $0x8] sm:$0xff] }
  0x65   :  { %2770 = vmatpush3.bf16.msra.mxu0 %v2769_v12  ;;  %v3180_v60 = vld [vmem:[#allocation6 + $0x10] sm:$0xff]  ;;  %v2847_v61 = vld [vmem:[#allocation7 + $0x68] sm:$0xff]   ;;  %v2848_v62 = vld [vmem:[#allocation7 + $0x70] sm:$0xff]  }
  0x66   :  { %2771 = vmatprep.subr.bf16.mxu0 %v3023_v0  ;;  %v2849_v63 = vld [vmem:[#allocation7 + $0x78] sm:$0xff]   ;;  %v2143_v4 = vld [vmem:[%s3343_s4] ss:$0 sm:$0xff]  ;;  %v2851_v20 = vld [vmem:[#allocation7 + $0x88] sm:$0xff]  }
  0x67   :  { %2451 = vmatpush3.bf16.msra.mxu1 %v2836_v18  ;;  %v2852_v21 = vld [vmem:[#allocation7 + $0x90] sm:$0xff]   ;;  %v2855_v24 = vld [vmem:[#allocation7 + $0xa8] sm:$0xff]  }
  0x68   :  { %2452 = vmatprep.subr.bf16.mxu1 %v2837_v19  ;;  %v2856_v25 = vld [vmem:[#allocation7 + $0xb0] sm:$0xff]  }
  0x69   :  { %2773 = vmatpush3.bf16.msra.mxu0 %v2772_v17 }
  0x6a   :  { %2774 = vmatprep.subr.bf16.mxu0 %v3023_v0 }
  0x6b   :  { %2453 = vmatpush3.bf16.msra.mxu1 %v2837_v19  ;;  %v2850_v19 = vld [vmem:[#allocation7 + $0x80] sm:$0xff]  }
  0x6c   :  { %2454 = vmatprep.subr.bf16.mxu1 %v2838_v23 }
  0x6d   :  { %2776 = vmatpush3.bf16.msra.mxu0 %v2775_v22  ;;  %v2853_v22 = vld [vmem:[#allocation7 + $0x98] sm:$0xff]  }
  0x6e   :  { %2777 = vmatprep.subr.bf16.mxu0 %v3023_v0 }
  0x6f   :  { %2455 = vmatpush3.bf16.msra.mxu1 %v2838_v23  ;;  %v2854_v23 = vld [vmem:[#allocation7 + $0xa0] sm:$0xff]  }
  0x70   :  { %2456 = vmatprep.subr.bf16.mxu1 %v2839_v34 }
  0x71   :  { %2779 = vmatpush3.bf16.msra.mxu0 %v2778_v26  ;;  %v2857_v26 = vld [vmem:[#allocation7 + $0xb8] sm:$0xff]  }
  0x72   :  { %2780 = vmatprep.subr.bf16.mxu0 %v3023_v0 }
  0x73   :  { %2457 = vmatpush3.bf16.msra.mxu1 %v2839_v34 }
  0x74   :  { %2458 = vmatprep.subr.bf16.mxu1 %v2840_v35 }
  0x75   :  { %2782 = vmatpush3.bf16.msra.mxu0 %v2781_v29  ;;  %v2156_v29 = vld [vmem:[%s3343_s4 + $0x1] ss:$0 sm:$0xff] }
  0x76   :  { %2783 = vmatprep.subr.bf16.mxu0 %v3023_v0 }
  0x77   :  { %2459 = vmatpush3.bf16.msra.mxu1 %v2840_v35 }
  0x78   :  { %2460 = vmatprep.subr.bf16.mxu1 %v2841_v36 }
  0x79   :  { %2785 = vmatpush3.bf16.msra.mxu0 %v2784_v30 }
  0x7a   :  { %2481 = vmatprep.subr.bf16.mxu0 %v2842_v48 }
  0x7b   :  { %2461 = vmatpush3.bf16.msra.mxu1 %v2841_v36 }
  0x7c   :  { %2438 = vmatmul.mubr.f32.vlgmr.msra.gmra.mrb[0].mxu0 %v93_v31  ;;  %2786 = vmatprep.subr.bf16.mxu1 %v3023_v0 }
  0x7d   :  { %2440 = vmatprep.mubr.msk.f32.mxu0 %vm3024_vm0, %v3025_v1  ;;  %2482 = vmatpush3.bf16.msra.mxu0 %v2842_v48  ;;  %v2862_v48 = vld [vmem:[#allocation7 + $0xe0] sm:$0xff]  }
  0x7e   :  { %2483 = vmatprep.subr.bf16.mxu0 %v2843_v49 }
  0x80   :  { %2441 = vmatmul.mubr.f32.gmra.mrb[2].mxu0 %v94_v32 }
  0x81   :  { %2443 = vmatprep.mubr.msk.f32.mxu0 %vm3024_vm0, %v3025_v1  ;;  %2484 = vmatpush3.bf16.msra.mxu0 %v2843_v49  ;;  %v2863_v49 = vld [vmem:[#allocation7 + $0xe8] sm:$0xff]  }
  0x82   :  { %2485 = vmatprep.subr.bf16.mxu0 %v2844_v50 }
  0x84   :  { %2444 = vmatmul.mubr.f32.gmra.mrb[4].mxu0 %v95_v33 }
  0x85   :  { %2486 = vmatpush3.bf16.msra.mxu0 %v2844_v50  ;;  %v2864_v50 = vld [vmem:[#allocation7 + $0xf0] sm:$0xff]  }
  0x86   :  { %2487 = vmatprep.subr.bf16.mxu0 %v2845_v51 }
  0x89   :  { %2488 = vmatpush3.bf16.msra.mxu0 %v2845_v51  ;;  %v2865_v51 = vld [vmem:[#allocation7 + $0xf8] sm:$0xff]  }
  0x8a   :  { %2489 = vmatprep.subr.bf16.mxu0 %v2846_v52 }
  0x8d   :  { %2490 = vmatpush3.bf16.msra.mxu0 %v2846_v52 }
  0x8e   :  { %2491 = vmatprep.subr.bf16.mxu0 %v2847_v61 }
  0x91   :  { %2492 = vmatpush3.bf16.msra.mxu0 %v2847_v61 }
  0x92   :  { %2493 = vmatprep.subr.bf16.mxu0 %v2848_v62 }
  0x95   :  { %2494 = vmatpush3.bf16.msra.mxu0 %v2848_v62 }
  0x96   :  { %2495 = vmatprep.subr.bf16.mxu0 %v2849_v63 }
  0x99   :  { %2496 = vmatpush3.bf16.msra.mxu0 %v2849_v63 }
  0x9a   :  { %2792 = vmatprep.subr.bf16.mxu0 %v3023_v0 }
 0x14f   :  { %v178_v37 = vpop.f32.mrb[0].mxu0 }
 0x150   :  { %v2439_v38 = vpop.f32.mrb[1].mxu0  ;;  %v192_v40 = vmax.f32 %v178_v37, 0.0 }
 0x153   :  { %v183_v39 = vpop.f32.mrb[2].mxu0 }
 0x154   :  { %v193_v41 = vmax.f32 %v183_v39, 0.0  ;;  %v2442_v42 = vpop.f32.mrb[3].mxu0 }
 0x156   :  { %v217_v43 = vpack.c.bf16 %v193_v41, %v192_v40 }
 0x157   :  { %v188_v44 = vpop.f32.mrb[4].mxu0 }
 0x158   :  { %v194_v45 = vmax.f32 %v188_v44, 0.0  ;;  %v2445_v46 = vpop.f32.mrb[5].mxu0  ;;  %2462 = vmatprep.mubr.bf16.mxu1 %v217_v43  ;;  %v2858_v44 = vld [vmem:[#allocation7 + $0xc0] sm:$0xff]  }
 0x159   :  { %v2860_v46 = vld [vmem:[#allocation7 + $0xd0] sm:$0xff]  }
 0x15a   :  { %v218_v47 = vpack.c.bf16 %v194_v45, %v194_v45  ;;  %v2859_v45 = vld [vmem:[#allocation7 + $0xc8] sm:$0xff]  }
 0x15c   :  { %2463 = vmatmul.mubr.bf16.vlgmr.msra.gmra.mrb[0].mxu1 %v218_v47  ;;  %v2861_v47 = vld [vmem:[#allocation7 + $0xd8] sm:$0xff]  }
 0x15d   :  { %2472 = vmatprep.mubr.msk.f32.mxu1 %vm3024_vm0, %v3025_v1 }
 0x22f   :  { %v2464_v53 = vpop.f32.mrb[0].mxu1 }
 0x230   :  { %v301_v54 = vpop.f32.mrb[1].mxu1 }
 0x231   :  { %v2465_v55 = vpop.f32.mrb[2].mxu1 }
 0x232   :  { %v304_v56 = vpop.f32.mrb[3].mxu1 }
 0x233   :  { %v2787_v57 = vpack.c.bf16 %v304_v56, %v301_v54  ;;  %v2169_v54 = vld [vmem:[%s3343_s4 + $0x2] ss:$0 sm:$0xff] }
 0x235   :  { %2788 = vmatpush3.bf16.msra.mxu1 %v2787_v57 }
 0x236   :  { %2470 = vmatprep.subr.mxu1 %v3025_v1 }
 0x239   :  { %2471 = vmatpush3.msra.mxu1 %v2464_v53 }
 0x23a   :  { %2473 = vmatmul.mubr.msk.f32.vlgmr.msra.gmra.mrb[4].mxu1 %vm321_vm1, %v3167_v58  ;;  %2789 = vmatprep.subr.bf16.mxu1 %v3023_v0 }
 0x23b   :  { %2475 = vmatprep.mubr.msk.f32.mxu1 %vm3024_vm0, %v3025_v1 }
 0x23e   :  { %2476 = vmatmul.mubr.msk.f32.gmra.mrb[6].mxu1 %vm321_vm1, %v3174_v59 }
 0x23f   :  { %2478 = vmatprep.mubr.msk.f32.mxu1 %vm3024_vm0, %v3025_v1 }
 0x242   :  { %2479 = vmatmul.mubr.msk.f32.gmra.mrb[8].mxu1 %vm321_vm1, %v3180_v60 }
 0x243   :  { %2507 = vmatprep.mubr.msk.f32.mxu1 %vm3024_vm0, %v3025_v1 }
 0x30d   :  { %v397_v2 = vpop.f32.mrb[4].mxu1 }
 0x30e   :  { %v2474_v3 = vpop.f32.mrb[5].mxu1  ;;  %v398_v6 = vadd.f32 %v2143_v4, %v397_v2 }
 0x311   :  { %v402_v5 = vpop.f32.mrb[6].mxu1 }
 0x312   :  { %v403_v7 = vadd.f32 %v2143_v4, %v402_v5  ;;  %v2477_v8 = vpop.f32.mrb[7].mxu1  ;;  %v2866_v5 = vld [vmem:[#allocation7 + $0x100] sm:$0xff]  }
 0x313   :  { %v2869_v8 = vld [vmem:[#allocation7 + $0x118] sm:$0xff]  }
 0x314   :  { %v430_v9 = vpack.c.bf16 %v403_v7, %v398_v6  ;;  %v2867_v6 = vld [vmem:[#allocation7 + $0x108] sm:$0xff]   ;;  %v2868_v7 = vld [vmem:[#allocation7 + $0x110] sm:$0xff]  }
 0x315   :  { %v407_v10 = vpop.f32.mrb[8].mxu1 }
 0x316   :  { %v408_v11 = vadd.f32 %v2143_v4, %v407_v10  ;;  %v2480_v12 = vpop.f32.mrb[9].mxu1  ;;  %2497 = vmatprep.mubr.bf16.mxu0 %v430_v9  ;;  %v2870_v9 = vld [vmem:[#allocation7 + $0x120] sm:$0xff]  }
 0x318   :  { %v431_v13 = vpack.c.bf16 %v408_v11, %v408_v11 }
 0x31a   :  { %2498 = vmatmul.mubr.bf16.vlgmr.msra.gmra.mrb[8].mxu0 %v431_v13 }
 0x31b   :  { %2542 = vmatprep.mubr.msk.f32.mxu0 %vm3024_vm0, %v3025_v1 }
 0x3ed   :  { %v2499_v14 = vpop.f32.mrb[8].mxu0 }
 0x3ee   :  { %v514_v15 = vpop.f32.mrb[9].mxu0 }
 0x3ef   :  { %v2500_v16 = vpop.f32.mrb[10].mxu0 }
 0x3f0   :  { %v517_v17 = vpop.f32.mrb[11].mxu0  ;;  %v2872_v16 = vld [vmem:[#allocation7 + $0x130] sm:$0xff]  }
 0x3f1   :  { %v2790_v18 = vpack.c.bf16 %v517_v17, %v514_v15  ;;  %v2871_v15 = vld [vmem:[#allocation7 + $0x128] sm:$0xff]   ;;  %v2873_v17 = vld [vmem:[#allocation7 + $0x138] sm:$0xff]  }
 0x3f3   :  { %2791 = vmatpush3.bf16.msra.mxu1 %v2790_v18 }
 0x3f4   :  { %2505 = vmatprep.subr.mxu1 %v3025_v1 }
 0x3f7   :  { %2506 = vmatpush3.msra.mxu1 %v2499_v14 }
 0x3f8   :  { %2508 = vmatmul.mubr.msk.f32.vlgmr.msra.gmra.mrb[10].mxu1 %vm321_vm1, %v3167_v58  ;;  %2516 = vmatprep.subr.bf16.mxu1 %v2850_v19 }
 0x3f9   :  { %2510 = vmatprep.mubr.msk.f32.mxu1 %vm3024_vm0, %v3025_v1  ;;  %2517 = vmatpush3.bf16.msra.mxu1 %v2850_v19 }
 0x3fa   :  { %2518 = vmatprep.subr.bf16.mxu1 %v2851_v20 }
 0x3fc   :  { %2511 = vmatmul.mubr.msk.f32.gmra.mrb[12].mxu1 %vm321_vm1, %v3174_v59 }
 0x3fd   :  { %2513 = vmatprep.mubr.msk.f32.mxu1 %vm3024_vm0, %v3025_v1  ;;  %2519 = vmatpush3.bf16.msra.mxu1 %v2851_v20  ;;  %v2182_v20 = vld [vmem:[%s3343_s4 + $0x3] ss:$0 sm:$0xff] }
 0x3fe   :  { %2520 = vmatprep.subr.bf16.mxu1 %v2852_v21 }
 0x400   :  { %2514 = vmatmul.mubr.msk.f32.gmra.mrb[14].mxu1 %vm321_vm1, %v3180_v60 }
 0x401   :  { %2521 = vmatpush3.bf16.msra.mxu1 %v2852_v21 }
 0x402   :  { %2522 = vmatprep.subr.bf16.mxu1 %v2853_v22 }
 0x405   :  { %2523 = vmatpush3.bf16.msra.mxu1 %v2853_v22 }
 0x406   :  { %2524 = vmatprep.subr.bf16.mxu1 %v2854_v23 }
 0x409   :  { %2525 = vmatpush3.bf16.msra.mxu1 %v2854_v23 }
 0x40a   :  { %2526 = vmatprep.subr.bf16.mxu1 %v2855_v24 }
 0x40d   :  { %2527 = vmatpush3.bf16.msra.mxu1 %v2855_v24 }
 0x40e   :  { %2528 = vmatprep.subr.bf16.mxu1 %v2856_v25 }
 0x411   :  { %2529 = vmatpush3.bf16.msra.mxu1 %v2856_v25 }
 0x412   :  { %2530 = vmatprep.subr.bf16.mxu1 %v2857_v26 }
 0x415   :  { %2531 = vmatpush3.bf16.msra.mxu1 %v2857_v26 }
 0x416   :  { %2795 = vmatprep.subr.bf16.mxu1 %v3023_v0 }
 0x4cb   :  { %v600_v27 = vpop.f32.mrb[10].mxu1 }
 0x4cc   :  { %v2509_v28 = vpop.f32.mrb[11].mxu1  ;;  %v601_v31 = vadd.f32 %v2156_v29, %v600_v27 }
 0x4cf   :  { %v605_v30 = vpop.f32.mrb[12].mxu1 }
 0x4d0   :  { %v606_v32 = vadd.f32 %v2156_v29, %v605_v30  ;;  %v2512_v33 = vpop.f32.mrb[13].mxu1  ;;  %v3245_v30 = vld [vmem:[%s3344_s5] sm:$0xff] }
 0x4d2   :  { %v633_v34 = vpack.c.bf16 %v606_v32, %v601_v31  ;;  %v3255_v31 = vld [vmem:[#allocation9] sm:$0xff] }
 0x4d3   :  { %v610_v35 = vpop.f32.mrb[14].mxu1 }
 0x4d4   :  { %v611_v36 = vadd.f32 %v2156_v29, %v610_v35  ;;  %v2515_v37 = vpop.f32.mrb[15].mxu1  ;;  %2532 = vmatprep.mubr.bf16.mxu1 %v633_v34 }
 0x4d6   :  { %v634_v38 = vpack.c.bf16 %v611_v36, %v611_v36 }
 0x4d8   :  { %2533 = vmatmul.mubr.bf16.vlgmr.msra.gmra.mrb[16].mxu1 %v634_v38 }
 0x4d9   :  { %2577 = vmatprep.mubr.msk.f32.mxu1 %vm3024_vm0, %v3025_v1 }
 0x5ab   :  { %v2534_v39 = vpop.f32.mrb[16].mxu1 }
 0x5ac   :  { %v717_v40 = vpop.f32.mrb[17].mxu1 }
 0x5ad   :  { %v2535_v41 = vpop.f32.mrb[18].mxu1 }
 0x5ae   :  { %v720_v42 = vpop.f32.mrb[19].mxu1 }
 0x5af   :  { %v2793_v43 = vpack.c.bf16 %v720_v42, %v717_v40 }
 0x5b1   :  { %2794 = vmatpush3.bf16.msra.mxu0 %v2793_v43  ;;  %v2875_v43 = vld [vmem:[#allocation7 + $0x148] sm:$0xff]  }
 0x5b2   :  { %2540 = vmatprep.subr.mxu0 %v3025_v1 }
 0x5b5   :  { %2541 = vmatpush3.msra.mxu0 %v2534_v39  ;;  %v2874_v39 = vld [vmem:[#allocation7 + $0x140] sm:$0xff]  }
 0x5b6   :  { %2543 = vmatmul.mubr.msk.f32.vlgmr.msra.gmra.mrb[6].mxu0 %vm321_vm1, %v3167_v58  ;;  %2551 = vmatprep.subr.bf16.mxu0 %v2858_v44 }
 0x5b7   :  { %2545 = vmatprep.mubr.msk.f32.mxu0 %vm3024_vm0, %v3025_v1  ;;  %2552 = vmatpush3.bf16.msra.mxu0 %v2858_v44  ;;  %v2876_v44 = vld [vmem:[#allocation7 + $0x150] sm:$0xff]  }
 0x5b8   :  { %2553 = vmatprep.subr.bf16.mxu0 %v2859_v45 }
 0x5ba   :  { %2546 = vmatmul.mubr.msk.f32.gmra.mrb[12].mxu0 %vm321_vm1, %v3174_v59 }
 0x5bb   :  { %2548 = vmatprep.mubr.msk.f32.mxu0 %vm3024_vm0, %v3025_v1  ;;  %2554 = vmatpush3.bf16.msra.mxu0 %v2859_v45  ;;  %v2877_v45 = vld [vmem:[#allocation7 + $0x158] sm:$0xff]  }
 0x5bc   :  { %2555 = vmatprep.subr.bf16.mxu0 %v2860_v46 }
 0x5be   :  { %2549 = vmatmul.mubr.msk.f32.gmra.mrb[14].mxu0 %vm321_vm1, %v3180_v60 }
 0x5bf   :  { %2556 = vmatpush3.bf16.msra.mxu0 %v2860_v46  ;;  %v2878_v46 = vld [vmem:[#allocation7 + $0x160] sm:$0xff]  }
 0x5c0   :  { %2557 = vmatprep.subr.bf16.mxu0 %v2861_v47 }
 0x5c3   :  { %2558 = vmatpush3.bf16.msra.mxu0 %v2861_v47  ;;  %v2879_v47 = vld [vmem:[#allocation7 + $0x168] sm:$0xff]  }
 0x5c4   :  { %2559 = vmatprep.subr.bf16.mxu0 %v2862_v48 }
 0x5c7   :  { %2560 = vmatpush3.bf16.msra.mxu0 %v2862_v48  ;;  %v2880_v48 = vld [vmem:[#allocation7 + $0x170] sm:$0xff]  }
 0x5c8   :  { %2561 = vmatprep.subr.bf16.mxu0 %v2863_v49 }
 0x5cb   :  { %2562 = vmatpush3.bf16.msra.mxu0 %v2863_v49  ;;  %v2881_v49 = vld [vmem:[#allocation7 + $0x178] sm:$0xff]  }
 0x5cc   :  { %2563 = vmatprep.subr.bf16.mxu0 %v2864_v50 }
 0x5cf   :  { %2564 = vmatpush3.bf16.msra.mxu0 %v2864_v50 }
 0x5d0   :  { %2565 = vmatprep.subr.bf16.mxu0 %v2865_v51 }
 0x5d3   :  { %2566 = vmatpush3.bf16.msra.mxu0 %v2865_v51 }
 0x5d4   :  { %2604 = vmatprep.subr.bf16.mxu0 %v2866_v5 }
 0x689   :  { %v803_v52 = vpop.f32.mrb[6].mxu0 }
 0x68a   :  { %v2544_v53 = vpop.f32.mrb[7].mxu0  ;;  %v804_v56 = vadd.f32 %v2169_v54, %v803_v52  ;;  %v2197_v52 = vld [vmem:[%s3343_s4 + $0x4] ss:$0 sm:$0xff] }
 0x68d   :  { %v808_v55 = vpop.f32.mrb[12].mxu0 }
 0x68e   :  { %v809_v57 = vadd.f32 %v2169_v54, %v808_v55  ;;  %v2547_v61 = vpop.f32.mrb[13].mxu0 }
 0x690   :  { %v836_v62 = vpack.c.bf16 %v809_v57, %v804_v56 }
 0x691   :  { %v813_v63 = vpop.f32.mrb[14].mxu0 }
 0x692   :  { %v814_v2 = vadd.f32 %v2169_v54, %v813_v63  ;;  %v2550_v3 = vpop.f32.mrb[15].mxu0  ;;  %2567 = vmatprep.mubr.bf16.mxu0 %v836_v62 }
 0x694   :  { %v837_v4 = vpack.c.bf16 %v814_v2, %v814_v2 }
 0x696   :  { %2568 = vmatmul.mubr.bf16.vlgmr.msra.gmra.mrb[16].mxu0 %v837_v4 }
 0x697   :  { %2605 = vmatpush3.bf16.msra.mxu0 %v2866_v5 }
 0x698   :  { %2606 = vmatprep.subr.bf16.mxu0 %v2867_v6 }
 0x69b   :  { %2607 = vmatpush3.bf16.msra.mxu0 %v2867_v6 }
 0x69c   :  { %2608 = vmatprep.subr.bf16.mxu0 %v2868_v7 }
 0x69f   :  { %2609 = vmatpush3.bf16.msra.mxu0 %v2868_v7 }
 0x6a0   :  { %2610 = vmatprep.subr.bf16.mxu0 %v2869_v8 }
 0x6a3   :  { %2611 = vmatpush3.bf16.msra.mxu0 %v2869_v8  ;;  %v2882_v8 = vld [vmem:[#allocation7 + $0x180] sm:$0xff]  }
 0x6a4   :  { %2612 = vmatprep.subr.bf16.mxu0 %v2870_v9 }
 0x6a7   :  { %2613 = vmatpush3.bf16.msra.mxu0 %v2870_v9  ;;  %v2883_v9 = vld [vmem:[#allocation7 + $0x188] sm:$0xff]  }
 0x6a8   :  { %2614 = vmatprep.subr.bf16.mxu0 %v2871_v15 }
 0x6ab   :  { %2615 = vmatpush3.bf16.msra.mxu0 %v2871_v15  ;;  %v2889_v15 = vld [vmem:[#allocation7 + $0x1b8] sm:$0xff]  }
 0x6ac   :  { %2616 = vmatprep.subr.bf16.mxu0 %v2872_v16 }
 0x6af   :  { %2617 = vmatpush3.bf16.msra.mxu0 %v2872_v16 }
 0x6b0   :  { %2618 = vmatprep.subr.bf16.mxu0 %v2873_v17 }
 0x6b3   :  { %2619 = vmatpush3.bf16.msra.mxu0 %v2873_v17 }
 0x6b4   :  { %2807 = vmatprep.subr.bf16.mxu0 %v3023_v0 }
 0x769   :  { %v2569_v10 = vpop.f32.mrb[16].mxu0 }
 0x76a   :  { %v920_v11 = vpop.f32.mrb[17].mxu0 }
 0x76b   :  { %v2570_v12 = vpop.f32.mrb[18].mxu0 }
 0x76c   :  { %v923_v13 = vpop.f32.mrb[19].mxu0  ;;  %v2886_v12 = vld [vmem:[#allocation7 + $0x1a0] sm:$0xff]  }
 0x76d   :  { %v2796_v14 = vpack.c.bf16 %v923_v13, %v920_v11  ;;  %v2885_v11 = vld [vmem:[#allocation7 + $0x198] sm:$0xff]   ;;  %v2887_v13 = vld [vmem:[#allocation7 + $0x1a8] sm:$0xff]  }
 0x76f   :  { %2797 = vmatpush3.bf16.msra.mxu1 %v2796_v14  ;;  %v2888_v14 = vld [vmem:[#allocation7 + $0x1b0] sm:$0xff]  }
 0x770   :  { %2575 = vmatprep.subr.mxu1 %v3025_v1 }
 0x773   :  { %2576 = vmatpush3.msra.mxu1 %v2569_v10  ;;  %v2884_v10 = vld [vmem:[#allocation7 + $0x190] sm:$0xff]  }
 0x774   :  { %2578 = vmatmul.mubr.msk.f32.vlgmr.msra.gmra.mrb[20].mxu1 %vm321_vm1, %v3167_v58  ;;  %2798 = vmatprep.subr.bf16.mxu1 %v3023_v0 }
 0x775   :  { %2580 = vmatprep.mubr.msk.f32.mxu1 %vm3024_vm0, %v3025_v1 }
 0x778   :  { %2581 = vmatmul.mubr.msk.f32.gmra.mrb[22].mxu1 %vm321_vm1, %v3174_v59 }
 0x779   :  { %2583 = vmatprep.mubr.msk.f32.mxu1 %vm3024_vm0, %v3025_v1 }
 0x77c   :  { %2584 = vmatmul.mubr.msk.f32.gmra.mrb[24].mxu1 %vm321_vm1, %v3180_v60 }
 0x77d   :  { %2592 = vmatprep.mubr.msk.f32.mxu1 %vm3024_vm0, %v3025_v1 }
 0x847   :  { %v1006_v18 = vpop.f32.mrb[20].mxu1 }
 0x848   :  { %v2579_v19 = vpop.f32.mrb[21].mxu1  ;;  %v1007_v22 = vadd.f32 %v2182_v20, %v1006_v18  ;;  %v2210_v18 = vld [vmem:[%s3343_s4 + $0x5] ss:$0 sm:$0xff] }
 0x84b   :  { %v1011_v21 = vpop.f32.mrb[22].mxu1 }
 0x84c   :  { %v1012_v23 = vadd.f32 %v2182_v20, %v1011_v21  ;;  %v2582_v24 = vpop.f32.mrb[23].mxu1 }
 0x84e   :  { %v2799_v25 = vpack.c.bf16 %v1012_v23, %v1007_v22 }
 0x84f   :  { %v1016_v26 = vpop.f32.mrb[24].mxu1 }
 0x850   :  { %v1017_v27 = vadd.f32 %v2182_v20, %v1016_v26  ;;  %v2585_v28 = vpop.f32.mrb[25].mxu1  ;;  %2800 = vmatpush3.bf16.msra.mxu1 %v2799_v25  ;;  %2620 = vmatprep.mubr.bf16.mxu0 %v2799_v25 }
 0x851   :  { %2590 = vmatprep.subr.mxu1 %v3025_v1 }
 0x852   :  { %v1190_v29 = vpack.c.bf16 %v1017_v27, %v1017_v27 }
 0x854   :  { %2591 = vmatpush3.msra.mxu1 %v1017_v27  ;;  %2621 = vmatmul.mubr.bf16.vlgmr.msra.gmra.mrb[20].mxu0 %v1190_v29 }
 0x855   :  { %2801 = vmatprep.subr.bf16.mxu1 %v3023_v0  ;;  %2593 = vmatmul.mubr.msk.f32.vlgmr.msra.gmra.mrb[26].mxu1 %vm321_vm1, %v3245_v30 }
 0x856   :  { %2803 = vmatpush3.bf16.msra.mxu1 %v2799_v25  ;;  %2601 = vmatprep.mubr.msk.f32.mxu1 %vm3024_vm0, %v3025_v1 }
 0x857   :  { %2599 = vmatprep.subr.mxu1 %v3025_v1  ;;  %2665 = vmatprep.mubr.msk.f32.mxu0 %vm3024_vm0, %v3025_v1 }
 0x85a   :  { %2600 = vmatpush3.msra.mxu1 %v1017_v27 }
 0x85b   :  { %2602 = vmatmul.mubr.msk.f32.vlgmr.msra.gmra.mrb[28].mxu1 %vm321_vm1, %v3255_v31  ;;  %2804 = vmatprep.subr.bf16.mxu1 %v3023_v0 }
 0x85c   :  { %2630 = vmatprep.mubr.msk.f32.mxu1 %vm3024_vm0, %v3025_v1 }
 0x927   :  { %v2622_v32 = vpop.f32.mrb[20].mxu0 }
 0x928   :  { %v1273_v33 = vpop.f32.mrb[21].mxu0  ;;  %v1089_v34 = vpop.f32.mrb[26].mxu1 }
 0x929   :  { %v2623_v35 = vpop.f32.mrb[22].mxu0  ;;  %v2594_v36 = vpop.f32.mrb[27].mxu1 }
 0x92a   :  { %v1276_v37 = vpop.f32.mrb[23].mxu0  ;;  %v2890_v35 = vld [vmem:[#allocation7 + $0x1c0] sm:$0xff]   ;;  %v2891_v36 = vld [vmem:[#allocation7 + $0x1c8] sm:$0xff]  }
 0x92b   :  { %v2805_v38 = vpack.c.bf16 %v1276_v37, %v1273_v33  ;;  %v2892_v37 = vld [vmem:[#allocation7 + $0x1d0] sm:$0xff]  }
 0x92d   :  { %2806 = vmatpush3.bf16.msra.mxu1 %v2805_v38  ;;  %v2893_v38 = vld [vmem:[#allocation7 + $0x1d8] sm:$0xff]  }
 0x92e   :  { %2628 = vmatprep.subr.mxu1 %v3025_v1  ;;  %v1162_v40 = vpop.f32.mrb[28].mxu1 }
 0x92f   :  { %v1166_v41 = vmul.f32 %v1162_v40, %v1089_v34  ;;  %v2603_v42 = vpop.f32.mrb[29].mxu1  ;;  %v2895_v40 = vld [vmem:[#allocation7 + $0x1e8] sm:$0xff]  }
 0x930   :  { %v2897_v42 = vld [vmem:[#allocation7 + $0x1f8] sm:$0xff]  }
 0x931   :  { %2629 = vmatpush3.msra.mxu1 %v2622_v32  ;;  %1167 = vadd.xlane.f32.xlu0 %v1166_v41  ;;  %v2896_v41 = vld [vmem:[#allocation7 + $0x1f0] sm:$0xff]  }
 0x932   :  { %2631 = vmatmul.mubr.msk.f32.vlgmr.msra.gmra.mrb[30].mxu1 %vm321_vm1, %v3167_v58  ;;  %2639 = vmatprep.subr.bf16.mxu1 %v2874_v39 }
 0x933   :  { %2633 = vmatprep.mubr.msk.f32.mxu1 %vm3024_vm0, %v3025_v1  ;;  %2640 = vmatpush3.bf16.msra.mxu1 %v2874_v39  ;;  %v2894_v39 = vld [vmem:[#allocation7 + $0x1e0] sm:$0xff]  }
 0x934   :  { %2641 = vmatprep.subr.bf16.mxu1 %v2875_v43 }
 0x936   :  { %2634 = vmatmul.mubr.msk.f32.gmra.mrb[32].mxu1 %vm321_vm1, %v3174_v59 }
 0x937   :  { %2636 = vmatprep.mubr.msk.f32.mxu1 %vm3024_vm0, %v3025_v1  ;;  %2642 = vmatpush3.bf16.msra.mxu1 %v2875_v43 }
 0x938   :  { %2643 = vmatprep.subr.bf16.mxu1 %v2876_v44 }
 0x93a   :  { %2637 = vmatmul.mubr.msk.f32.gmra.mrb[34].mxu1 %vm321_vm1, %v3180_v60 }
 0x93b   :  { %2644 = vmatpush3.bf16.msra.mxu1 %v2876_v44 }
 0x93c   :  { %2645 = vmatprep.subr.bf16.mxu1 %v2877_v45 }
 0x93f   :  { %2646 = vmatpush3.bf16.msra.mxu1 %v2877_v45  ;;  %v2223_v45 = vld [vmem:[%s3343_s4 + $0x6] ss:$0 sm:$0xff] }
 0x940   :  { %2647 = vmatprep.subr.bf16.mxu1 %v2878_v46 }
 0x943   :  { %2648 = vmatpush3.bf16.msra.mxu1 %v2878_v46 }
 0x944   :  { %2649 = vmatprep.subr.bf16.mxu1 %v2879_v47 }
 0x947   :  { %2650 = vmatpush3.bf16.msra.mxu1 %v2879_v47 }
 0x948   :  { %2651 = vmatprep.subr.bf16.mxu1 %v2880_v48 }
 0x94b   :  { %2652 = vmatpush3.bf16.msra.mxu1 %v2880_v48 }
 0x94c   :  { %2653 = vmatprep.subr.bf16.mxu1 %v2881_v49 }
 0x94f   :  { %2654 = vmatpush3.bf16.msra.mxu1 %v2881_v49 }
 0x950   :  { %2810 = vmatprep.subr.bf16.mxu1 %v3023_v0 }
 0xa05   :  { %v1359_v50 = vpop.f32.mrb[30].mxu1 }
 0xa06   :  { %v2632_v51 = vpop.f32.mrb[31].mxu1  ;;  %v1360_v54 = vadd.f32 %v2197_v52, %v1359_v50 }
 0xa09   :  { %v1364_v53 = vpop.f32.mrb[32].mxu1 }
 0xa0a   :  { %v1365_v55 = vadd.f32 %v2197_v52, %v1364_v53  ;;  %v2635_v56 = vpop.f32.mrb[33].mxu1 }
 0xa0c   :  { %v1392_v57 = vpack.c.bf16 %v1365_v55, %v1360_v54 }
 0xa0d   :  { %v1369_v61 = vpop.f32.mrb[34].mxu1 }
 0xa0e   :  { %v1370_v62 = vadd.f32 %v2197_v52, %v1369_v61  ;;  %v2638_v63 = vpop.f32.mrb[35].mxu1  ;;  %2655 = vmatprep.mubr.bf16.mxu1 %v1392_v57 }
 0xa10   :  { %v1393_v2 = vpack.c.bf16 %v1370_v62, %v1370_v62 }
 0xa12   :  { %2656 = vmatmul.mubr.bf16.vlgmr.msra.gmra.mrb[36].mxu1 %v1393_v2 }
 0xa13   :  { %2700 = vmatprep.mubr.msk.f32.mxu1 %vm3024_vm0, %v3025_v1 }
 0xae5   :  { %v2657_v3 = vpop.f32.mrb[36].mxu1 }
 0xae6   :  { %v1476_v4 = vpop.f32.mrb[37].mxu1 }
 0xae7   :  { %v2658_v5 = vpop.f32.mrb[38].mxu1 }
 0xae8   :  { %v1479_v6 = vpop.f32.mrb[39].mxu1 }
 0xae9   :  { %v2808_v7 = vpack.c.bf16 %v1479_v6, %v1476_v4 }
 0xaeb   :  { %2809 = vmatpush3.bf16.msra.mxu0 %v2808_v7 }
 0xaec   :  { %2663 = vmatprep.subr.mxu0 %v3025_v1 }
 0xaef   :  { %2664 = vmatpush3.msra.mxu0 %v2657_v3 }
 0xaf0   :  { %2666 = vmatmul.mubr.msk.f32.vlgmr.msra.gmra.mrb[24].mxu0 %vm321_vm1, %v3167_v58  ;;  %2674 = vmatprep.subr.bf16.mxu0 %v2882_v8 }
 0xaf1   :  { %2668 = vmatprep.mubr.msk.f32.mxu0 %vm3024_vm0, %v3025_v1  ;;  %2675 = vmatpush3.bf16.msra.mxu0 %v2882_v8 }
 0xaf2   :  { %2676 = vmatprep.subr.bf16.mxu0 %v2883_v9 }
 0xaf4   :  { %2669 = vmatmul.mubr.msk.f32.gmra.mrb[26].mxu0 %vm321_vm1, %v3174_v59 }
 0xaf5   :  { %2671 = vmatprep.mubr.msk.f32.mxu0 %vm3024_vm0, %v3025_v1  ;;  %2677 = vmatpush3.bf16.msra.mxu0 %v2883_v9 }
 0xaf6   :  { %2678 = vmatprep.subr.bf16.mxu0 %v2884_v10 }
 0xaf8   :  { %2672 = vmatmul.mubr.msk.f32.gmra.mrb[28].mxu0 %vm321_vm1, %v3180_v60 }
 0xaf9   :  { %2679 = vmatpush3.bf16.msra.mxu0 %v2884_v10 }
 0xafa   :  { %2680 = vmatprep.subr.bf16.mxu0 %v2885_v11 }
 0xafd   :  { %2681 = vmatpush3.bf16.msra.mxu0 %v2885_v11 }
 0xafe   :  { %2682 = vmatprep.subr.bf16.mxu0 %v2886_v12 }
 0xb01   :  { %2683 = vmatpush3.bf16.msra.mxu0 %v2886_v12 }
 0xb02   :  { %2684 = vmatprep.subr.bf16.mxu0 %v2887_v13 }
 0xb05   :  { %2685 = vmatpush3.bf16.msra.mxu0 %v2887_v13  ;;  %v1168_v13 = vpop.xlane.xlu0 %1167 }
 0xb06   :  { %2686 = vmatprep.subr.bf16.mxu0 %v2888_v14 }
 0xb09   :  { %2687 = vmatpush3.bf16.msra.mxu0 %v2888_v14 }
 0xb0a   :  { %2688 = vmatprep.subr.bf16.mxu0 %v2889_v15 }
 0xb0d   :  { %2689 = vmatpush3.bf16.msra.mxu0 %v2889_v15 }
 0xb0e   :  { %2813 = vmatprep.subr.bf16.mxu0 %v3023_v0 }
 0xbc3   :  { %v1562_v16 = vpop.f32.mrb[24].mxu0 }
 0xbc4   :  { %v2667_v17 = vpop.f32.mrb[25].mxu0  ;;  %v1563_v20 = vadd.f32 %v2210_v18, %v1562_v16 }
 0xbc7   :  { %v1567_v19 = vpop.f32.mrb[26].mxu0 }
 0xbc8   :  { %v1568_v21 = vadd.f32 %v2210_v18, %v1567_v19  ;;  %v2670_v22 = vpop.f32.mrb[27].mxu0 }
 0xbca   :  { %v1595_v23 = vpack.c.bf16 %v1568_v21, %v1563_v20 }
 0xbcb   :  { %v1572_v24 = vpop.f32.mrb[28].mxu0 }
 0xbcc   :  { %v1573_v25 = vadd.f32 %v2210_v18, %v1572_v24  ;;  %v2673_v26 = vpop.f32.mrb[29].mxu0  ;;  %2690 = vmatprep.mubr.bf16.mxu0 %v1595_v23 }
 0xbce   :  { %v1596_v27 = vpack.c.bf16 %v1573_v25, %v1573_v25 }
 0xbd0   :  { %2691 = vmatmul.mubr.bf16.vlgmr.msra.gmra.mrb[32].mxu0 %v1596_v27 }
 0xbd1   :  { %2735 = vmatprep.mubr.msk.f32.mxu0 %vm3024_vm0, %v3025_v1 }
 0xca3   :  { %v2692_v28 = vpop.f32.mrb[32].mxu0 }
 0xca4   :  { %v1679_v29 = vpop.f32.mrb[33].mxu0 }
 0xca5   :  { %v2693_v32 = vpop.f32.mrb[34].mxu0 }
 0xca6   :  { %v1682_v33 = vpop.f32.mrb[35].mxu0 }
 0xca7   :  { %v2811_v34 = vpack.c.bf16 %v1682_v33, %v1679_v29 }
 0xca9   :  { %2812 = vmatpush3.bf16.msra.mxu1 %v2811_v34 }
 0xcaa   :  { %2698 = vmatprep.subr.mxu1 %v3025_v1 }
 0xcad   :  { %2699 = vmatpush3.msra.mxu1 %v2692_v28 }
 0xcae   :  { %2701 = vmatmul.mubr.msk.f32.vlgmr.msra.gmra.mrb[40].mxu1 %vm321_vm1, %v3167_v58  ;;  %2709 = vmatprep.subr.bf16.mxu1 %v2890_v35 }
 0xcaf   :  { %2703 = vmatprep.mubr.msk.f32.mxu1 %vm3024_vm0, %v3025_v1  ;;  %2710 = vmatpush3.bf16.msra.mxu1 %v2890_v35 }
 0xcb0   :  { %2711 = vmatprep.subr.bf16.mxu1 %v2891_v36 }
 0xcb2   :  { %2704 = vmatmul.mubr.msk.f32.gmra.mrb[42].mxu1 %vm321_vm1, %v3174_v59 }
 0xcb3   :  { %2706 = vmatprep.mubr.msk.f32.mxu1 %vm3024_vm0, %v3025_v1  ;;  %2712 = vmatpush3.bf16.msra.mxu1 %v2891_v36 }
 0xcb4   :  { %2713 = vmatprep.subr.bf16.mxu1 %v2892_v37 }
 0xcb6   :  { %2707 = vmatmul.mubr.msk.f32.gmra.mrb[44].mxu1 %vm321_vm1, %v3180_v60 }
 0xcb7   :  { %2714 = vmatpush3.bf16.msra.mxu1 %v2892_v37 }
 0xcb8   :  { %2715 = vmatprep.subr.bf16.mxu1 %v2893_v38 }
 0xcbb   :  { %2716 = vmatpush3.bf16.msra.mxu1 %v2893_v38 }
 0xcbc   :  { %2717 = vmatprep.subr.bf16.mxu1 %v2894_v39 }
 0xcbf   :  { %2718 = vmatpush3.bf16.msra.mxu1 %v2894_v39 }
 0xcc0   :  { %2719 = vmatprep.subr.bf16.mxu1 %v2895_v40 }
 0xcc3   :  { %2720 = vmatpush3.bf16.msra.mxu1 %v2895_v40 }
 0xcc4   :  { %2721 = vmatprep.subr.bf16.mxu1 %v2896_v41 }
 0xcc7   :  { %2722 = vmatpush3.bf16.msra.mxu1 %v2896_v41 }
 0xcc8   :  { %2723 = vmatprep.subr.bf16.mxu1 %v2897_v42 }
 0xccb   :  { %2724 = vmatpush3.bf16.msra.mxu1 %v2897_v42 }
 0xccc   :  { %2819 = vmatprep.subr.bf16.mxu1 %v3023_v0 }
 0xd81   :  { %v1765_v43 = vpop.f32.mrb[40].mxu1 }
 0xd82   :  { %v2702_v44 = vpop.f32.mrb[41].mxu1  ;;  %v1766_v47 = vadd.f32 %v2223_v45, %v1765_v43 }
 0xd85   :  { %v1770_v46 = vpop.f32.mrb[42].mxu1 }
 0xd86   :  { %v1771_v48 = vadd.f32 %v2223_v45, %v1770_v46  ;;  %v2705_v49 = vpop.f32.mrb[43].mxu1 }
 0xd88   :  { %v1798_v50 = vpack.c.bf16 %v1771_v48, %v1766_v47 }
 0xd89   :  { %v1775_v51 = vpop.f32.mrb[44].mxu1 }
 0xd8a   :  { %v1776_v52 = vadd.f32 %v2223_v45, %v1775_v51  ;;  %v2708_v53 = vpop.f32.mrb[45].mxu1  ;;  %2725 = vmatprep.mubr.bf16.mxu1 %v1798_v50 }
 0xd8c   :  { %v1799_v54 = vpack.c.bf16 %v1776_v52, %v1776_v52 }
 0xd8e   :  { %2726 = vmatmul.mubr.bf16.vlgmr.msra.gmra.mrb[48].mxu1 %v1799_v54 }
 0xd8f   :  { %2759 = vmatprep.mubr.msk.f32.mxu1 %vm3024_vm0, %v3025_v1 }
 0xe61   :  { %v2727_v55 = vpop.f32.mrb[48].mxu1 }
 0xe62   :  { %v1882_v56 = vpop.f32.mrb[49].mxu1 }
 0xe63   :  { %v2728_v57 = vpop.f32.mrb[50].mxu1 }
 0xe64   :  { %v1885_v61 = vpop.f32.mrb[51].mxu1 }
 0xe65   :  { %v2814_v62 = vpack.c.bf16 %v1885_v61, %v1882_v56 }
 0xe67   :  { %2815 = vmatpush3.bf16.msra.mxu0 %v2814_v62 }
 0xe68   :  { %2733 = vmatprep.subr.mxu0 %v3025_v1 }
 0xe6b   :  { %2734 = vmatpush3.msra.mxu0 %v2727_v55 }
 0xe6c   :  { %2736 = vmatmul.mubr.msk.f32.vlgmr.msra.gmra.mrb[30].mxu0 %vm321_vm1, %v3167_v58  ;;  %2816 = vmatprep.subr.bf16.mxu0 %v3023_v0  ;;  %v2236_v0 = vld [vmem:[%s3343_s4 + $0x7] ss:$0 sm:$0xff] }
 0xe6d   :  { %2738 = vmatprep.mubr.msk.f32.mxu0 %vm3024_vm0, %v3025_v1 }
 0xe70   :  { %2739 = vmatmul.mubr.msk.f32.gmra.mrb[36].mxu0 %vm321_vm1, %v3174_v59 }
 0xe71   :  { %2741 = vmatprep.mubr.msk.f32.mxu0 %vm3024_vm0, %v3025_v1 }
 0xe74   :  { %2742 = vmatmul.mubr.msk.f32.gmra.mrb[38].mxu0 %vm321_vm1, %v3180_v60 }
 0xe75   :  { %2750 = vmatprep.mubr.msk.f32.mxu0 %vm3024_vm0, %v3025_v1 }
 0xf3f   :  { %v1968_v63 = vpop.f32.mrb[30].mxu0 }
 0xf40   :  { %v2737_v2 = vpop.f32.mrb[31].mxu0  ;;  %v1969_v3 = vadd.f32 %v2236_v0, %v1968_v63 }
 0xf43   :  { %v1973_v58 = vpop.f32.mrb[36].mxu0 }
 0xf44   :  { %v1974_v4 = vadd.f32 %v2236_v0, %v1973_v58  ;;  %v2740_v5 = vpop.f32.mrb[37].mxu0 }
 0xf46   :  { %v2817_v59 = vpack.c.bf16 %v1974_v4, %v1969_v3 }
 0xf47   :  { %v1978_v6 = vpop.f32.mrb[38].mxu0 }
 0xf48   :  { %2818 = vmatpush3.bf16.msra.mxu0 %v2817_v59  ;;  %2821 = vmatpush3.bf16.msra.mxu1 %v2817_v59  ;;  %v1979_v7 = vadd.f32 %v2236_v0, %v1978_v6  ;;  %v2743_v8 = vpop.f32.mrb[39].mxu0 }
 0xf49   :  { %2748 = vmatprep.subr.mxu0 %v3025_v1  ;;  %2757 = vmatprep.subr.mxu1 %v3025_v1 }
 0xf4c   :  { %2749 = vmatpush3.msra.mxu0 %v1979_v7  ;;  %2758 = vmatpush3.msra.mxu1 %v1979_v7 }
 0xf4d   :  { %2751 = vmatmul.mubr.msk.f32.vlgmr.msra.gmra.mrb[40].mxu0 %vm321_vm1, %v3245_v30  ;;  %2760 = vmatmul.mubr.msk.f32.vlgmr.msra.gmra.mrb[46].mxu1 %vm321_vm1, %v3255_v31 }
0x1020   :  { %v2048_v60 = vpop.f32.mrb[40].mxu0  ;;  %v2118_v9 = vpop.f32.mrb[46].mxu1 }
0x1021   :  { %v2122_v10 = vmul.f32 %v2118_v9, %v2048_v60  ;;  %v2752_v11 = vpop.f32.mrb[41].mxu0  ;;  %v2761_v12 = vpop.f32.mrb[47].mxu1 }
0x1023   :  { %2123 = vadd.xlane.f32.xlu0 %v2122_v10 }
0x10b0   :  { %v2124_v14 = vpop.xlane.xlu0 %2123 }
0x10b1   :  { %v2125_v15 = vadd.f32 %v2124_v14, %v1168_v13 }
0x10b3   :  { %2127 = vst.msk [vmem:[%s3346_s7] sm:$0xff] %vm2126_vm2, %v2125_v15 }
0x10b4   :  { %2132 = vsyncpa [#allocation3], 1 }
0x10b5   :  { %2133 = vsyncpa [#allocation5], 1 }
0x10b6   :  { %2134 = vsyncpa [#allocation8], 1 }

</bundles_post_ra>
